<compile_context>
chip_gen: v5e
topology: v5e:2x2
jax: 0.10.0
libtpu: 0.0.40
codegen_flags: <defaults>
</compile_context>

<pallas_src>
import functools
import numpy as np
import jax
import jax.numpy as jnp
from jax import lax
from jax.experimental import pallas as pl
from jax.experimental.pallas import tpu as pltpu

LEAKY_SLOPE = 0.1                       # LeakyReLU slope of Conv2dBNLeakyReLU
_VMEM_LIMIT_BYTES = 32 * 1024 * 1024    # safe on v5e/v6e/v7x
_VMEM_TILE_BUDGET = 24 * 1024 * 1024    # budget for the pipelined blocks


def _round_up(x, m):
    return (x + m - 1) // m * m


def _tensorcores_per_chip():
    """Best-effort TensorCore count per chip (2 on v7x, 1 on v5e/v6e)."""
    try:
        info = pltpu.get_tpu_info()
        for name in ("num_cores", "num_tensorcores", "tensorcores_per_chip",
                     "core_count", "cores_per_chip"):
            v = getattr(info, name, None)
            if v:
                return max(1, min(4, int(v)))
    except Exception:
        pass
    try:
        if "v7" in jax.devices()[0].device_kind.lower():
            return 2
    except Exception:
        pass
    return 1


def _choose_tiling(M, in_row_bytes, out_row_bytes):
    """One tile per TensorCore, capped so double-buffered blocks fit VMEM."""
    n_tc = _tensorcores_per_chip()
    per_row = 2 * (in_row_bytes + out_row_bytes)          # 2-deep in + out bufs
    tm_cap = max(16, (_VMEM_TILE_BUDGET // per_row) // 16 * 16)
    tm = min(tm_cap, _round_up(pl.cdiv(M, n_tc), 16))     # bf16-friendly rows
    return tm, pl.cdiv(M, tm)


def _box_predictor_kernel(patch_ref, w1_ref, b1_ref, w2_ref, b2_ref, o_ref):
    # patch_ref: (TM, 9*C_in)      bf16 im2col rows (M = B*H*W folded)
    # w1_ref   : (9*C_in, C_mid)   bf16 3x3 conv weight, BN scale folded in
    # b1_ref   : (1, C_mid)        f32 folded BN bias
    # w2_ref   : (C_mid, C_out_p)  bf16 1x1 conv weight, zero-padded to 128*n
    # b2_ref   : (1, C_out_p)      f32 1x1 conv bias, zero-padded
    # o_ref    : (TM, C_out_p)     f32
    y = jnp.dot(patch_ref[...], w1_ref[...],
                preferred_element_type=jnp.float32) + b1_ref[...]
    y = jnp.maximum(y, LEAKY_SLOPE * y)                   # LeakyReLU(0.1)
    o_ref[...] = jnp.dot(y.astype(jnp.bfloat16), w2_ref[...],
                         preferred_element_type=jnp.float32) + b2_ref[...]


@functools.partial(jax.jit, static_argnames=("fused",))
def _forward(x_nhwc, w1, bn_scale, bn_bias, w2, b2, *, fused=True):
    B, H, W, C_in = x_nhwc.shape
    C_mid = w1.shape[-1]
    C_out = w2.shape[-1]
    K = 9 * C_in

    # --- wrapper-side prep (fusible producers; folded into the kernel input
    #     when allow_input_fusion is honoured) ---------------------------------
    x_bf = x_nhwc.astype(jnp.bfloat16)
    x_pad = jnp.pad(x_bf, ((0, 0), (1, 1), (1, 1), (0, 0)))
    patches = jnp.concatenate(
        [x_pad[:, dy:dy + H, dx:dx + W, :] for dy in range(3) for dx in range(3)],
        axis=-1).reshape(B * H * W, K)

    # Fold eval-mode BN scale into conv1 weight columns; keep bias in-kernel.
    w1_mat = (w1 * bn_scale[None, None, None, :]).reshape(K, C_mid)
    w1_mat = w1_mat.astype(jnp.bfloat16)
    b1 = bn_bias.reshape(1, C_mid).astype(jnp.float32)

    # Pad C_out (255) to 256 for lane-dense, unmasked output stores.
    C_out_p = _round_up(C_out, 128)
    w2_p = jnp.pad(w2, ((0, 0), (0, C_out_p - C_out))).astype(jnp.bfloat16)
    b2_p = jnp.pad(b2.reshape(1, C_out),
                   ((0, 0), (0, C_out_p - C_out))).astype(jnp.float32)

    # Generation-aware tiling: one tile per TensorCore, VMEM-capped.
    M = B * H * W
    TM, num_tiles = _choose_tiling(M, K * 2, C_out_p * 4)
    M_pad = num_tiles * TM
    if M_pad > M:
        patches = jnp.pad(patches, ((0, M_pad - M), (0, 0)))

    flops = 2 * M_pad * (K * C_mid + C_mid * C_out_p)
    bytes_accessed = (M_pad * K * 2 + K * C_mid * 2 + C_mid * 4
                      + C_mid * C_out_p * 2 + C_out_p * 4
                      + M_pad * C_out_p * 4)
    cost = pl.CostEstimate(flops=flops, transcendentals=0,
                           bytes_accessed=bytes_accessed)

    const_kw = dict(pipeline_mode=pl.Buffered(1)) if fused else {}
    compiler_params = pltpu.CompilerParams(
        dimension_semantics=("parallel",),
        vmem_limit_bytes=_VMEM_LIMIT_BYTES,
        allow_input_fusion=([True, False, False, False, False]
                            if fused else None),
    )

    out_flat = pl.pallas_call(
        _box_predictor_kernel,
        out_shape=jax.ShapeDtypeStruct((M_pad, C_out_p), jnp.float32),
        grid=(num_tiles,),
        in_specs=[
            pl.BlockSpec((TM, K), lambda i: (i, 0)),
            pl.BlockSpec((K, C_mid), lambda i: (0, 0), **const_kw),
            pl.BlockSpec((1, C_mid), lambda i: (0, 0), **const_kw),
            pl.BlockSpec((C_mid, C_out_p), lambda i: (0, 0), **const_kw),
            pl.BlockSpec((1, C_out_p), lambda i: (0, 0), **const_kw),
        ],
        out_specs=pl.BlockSpec((TM, C_out_p), lambda i: (i, 0)),
        compiler_params=compiler_params,
        cost_estimate=cost,
    )(patches, w1_mat, b1, w2_p, b2_p)

    # Drop the M / channel padding and restore NHWC.
    return out_flat[:M, :C_out].reshape(B, H, W, C_out)


def yolov3_box_predictor(x_nhwc, w1, bn_scale, bn_bias, w2, b2):
    """x_nhwc: (B,H,W,Cin) f32; w1: (3,3,Cin,Cmid) HWIO; w2: (Cmid,Cout).
    Returns (B,H,W,Cout) f32."""
    try:
        out = _forward(x_nhwc, w1, bn_scale, bn_bias, w2, b2, fused=True)
        return jax.block_until_ready(out)
    except Exception:
        # Conservative fallback (no Buffered(1), no input fusion) in case the
        # installed jax rejects those options — same kernel, same math.
        out = _forward(x_nhwc, w1, bn_scale, bn_bias, w2, b2, fused=False)
        return jax.block_until_ready(out)


def _reference(x_nhwc, w1, bn_scale, bn_bias, w2, b2):
    """Pure-JAX f32 reference (same math, lax.conv)."""
    y = lax.conv_general_dilated(
        x_nhwc, w1, window_strides=(1, 1), padding=((1, 1), (1, 1)),
        dimension_numbers=("NHWC", "HWIO", "NHWC"))
    y = y * bn_scale + bn_bias
    y = jnp.where(y > 0, y, LEAKY_SLOPE * y)
    out = jnp.einsum("bhwc,cd->bhwd", y, w2) + b2
    return out


if __name__ == "__main__":
    # Small shapes consistent with the module: batch=2, in_channels=4,
    # conv1 out_channels=32, spatial 16x16, num_classes=80, 3 anchors/cell.
    B, C_in, H, W = 2, 4, 16, 16
    C_mid = 32
    num_classes, num_anchors = 80, 3
    C_out = num_anchors * (num_classes + 5)        # 255

    key = jax.random.PRNGKey(0)
    kx, kw1, kg, kb, km, kv, kw2 = jax.random.split(key, 7)

    x_nhwc = jax.random.normal(kx, (B, H, W, C_in), dtype=jnp.float32)

    # conv1: 3x3, bias=False (BN follows), kaiming-ish scale
    w1 = jax.random.normal(kw1, (3, 3, C_in, C_mid), dtype=jnp.float32) \
         * np.sqrt(2.0 / (9 * C_in)).astype(np.float32)

    # BatchNorm (eval mode) parameters, folded into scale/bias
    eps = 1e-5
    gamma = 1.0 + 0.1 * jax.random.normal(kg, (C_mid,), dtype=jnp.float32)
    beta = 0.1 * jax.random.normal(kb, (C_mid,), dtype=jnp.float32)
    running_mean = 0.1 * jax.random.normal(km, (C_mid,), dtype=jnp.float32)
    running_var = 0.5 + jnp.abs(jax.random.normal(kv, (C_mid,), dtype=jnp.float32))
    bn_scale = gamma / jnp.sqrt(running_var + eps)
    bn_bias = beta - running_mean * bn_scale
    # TODO(synk): training-mode BatchNorm (batch statistics) is not modeled; eval-mode fold only.

    # conv2: 1x1, weight ~ N(0, 0.01), bias = 0 (matches the PyTorch init)
    w2 = 0.01 * jax.random.normal(kw2, (C_mid, C_out), dtype=jnp.float32)
    b2 = jnp.zeros((C_out,), dtype=jnp.float32)

    out = yolov3_box_predictor(x_nhwc, w1, bn_scale, bn_bias, w2, b2)
    out = jax.block_until_ready(out)

    ref = _reference(x_nhwc, w1, bn_scale, bn_bias, w2, b2)
    # Tolerance relaxed because the kernel feeds the MXU bf16 inputs
    # (accumulation stays f32).
    np.testing.assert_allclose(np.asarray(out), np.asarray(ref),
                               rtol=2e-2, atol=2e-2)

    print("KERNEL_OK")
</pallas_src>

<mosaic_0001>
module attributes {stable_mosaic.version = 11 : i64} {
  func.func @_box_predictor_kernel(%arg0: i32, %arg1: memref<512x36xbf16, #tpu.memory_space<vmem>>, %arg2: memref<36x32xbf16, #tpu.memory_space<vmem>>, %arg3: memref<1x32xf32, #tpu.memory_space<vmem>>, %arg4: memref<32x256xbf16, #tpu.memory_space<vmem>>, %arg5: memref<1x256xf32, #tpu.memory_space<vmem>>, %arg6: memref<512x256xf32, #tpu.memory_space<vmem>>) attributes {dimension_semantics = [#tpu.dimension_semantics<parallel>], iteration_bounds = array<i64: 1>, scalar_prefetch = 0 : i64, scratch_operands = 0 : i64, tpu.core_type = #tpu.core_type<tc>, window_params = [{transform_indices = @transform_0, window_bounds = array<i64: 512, 36>}, {pipeline_mode = #tpu.pipeline_mode<synchronous>, transform_indices = @transform_1, window_bounds = array<i64: 36, 32>}, {pipeline_mode = #tpu.pipeline_mode<synchronous>, transform_indices = @transform_2, window_bounds = array<i64: 1, 32>}, {pipeline_mode = #tpu.pipeline_mode<synchronous>, transform_indices = @transform_3, window_bounds = array<i64: 32, 256>}, {pipeline_mode = #tpu.pipeline_mode<synchronous>, transform_indices = @transform_4, window_bounds = array<i64: 1, 256>}, {transform_indices = @transform_5, window_bounds = array<i64: 512, 256>}]} {
    %c0 = arith.constant 0 : index
    %c0_0 = arith.constant 0 : index
    %0 = vector.load %arg1[%c0, %c0_0] : memref<512x36xbf16, #tpu.memory_space<vmem>>, vector<512x36xbf16>
    %c0_1 = arith.constant 0 : index
    %c0_2 = arith.constant 0 : index
    %1 = vector.load %arg2[%c0_1, %c0_2] : memref<36x32xbf16, #tpu.memory_space<vmem>>, vector<36x32xbf16>
    %cst = arith.constant dense<0.000000e+00> : vector<512x32xf32>
    %2 = tpu.matmul %0, %1, %cst {dimension_numbers = #tpu.dot_dimension_numbers<[1], [0], [0], [1], [0, 0, 1, 1], [], []>} : vector<512x36xbf16>, vector<36x32xbf16>, vector<512x32xf32> -> vector<512x32xf32>
    %c0_3 = arith.constant 0 : index
    %c0_4 = arith.constant 0 : index
    %3 = vector.load %arg3[%c0_3, %c0_4] : memref<1x32xf32, #tpu.memory_space<vmem>>, vector<1x32xf32>
    %4 = vector.broadcast %3 : vector<1x32xf32> to vector<512x32xf32>
    %5 = arith.addf %2, %4 : vector<512x32xf32>
    %cst_5 = arith.constant 1.000000e-01 : f32
    %6 = vector.broadcast %cst_5 : f32 to vector<512x32xf32>
    %7 = arith.mulf %6, %5 : vector<512x32xf32>
    %8 = arith.maximumf %5, %7 : vector<512x32xf32>
    %9 = arith.truncf %8 : vector<512x32xf32> to vector<512x32xbf16>
    %c0_6 = arith.constant 0 : index
    %c0_7 = arith.constant 0 : index
    %10 = vector.load %arg4[%c0_6, %c0_7] : memref<32x256xbf16, #tpu.memory_space<vmem>>, vector<32x256xbf16>
    %cst_8 = arith.constant dense<0.000000e+00> : vector<512x256xf32>
    %11 = tpu.matmul %9, %10, %cst_8 {dimension_numbers = #tpu.dot_dimension_numbers<[1], [0], [0], [1], [0, 0, 1, 1], [], []>} : vector<512x32xbf16>, vector<32x256xbf16>, vector<512x256xf32> -> vector<512x256xf32>
    %c0_9 = arith.constant 0 : index
    %c0_10 = arith.constant 0 : index
    %12 = vector.load %arg5[%c0_9, %c0_10] : memref<1x256xf32, #tpu.memory_space<vmem>>, vector<1x256xf32>
    %13 = vector.broadcast %12 : vector<1x256xf32> to vector<512x256xf32>
    %14 = arith.addf %11, %13 : vector<512x256xf32>
    %c0_11 = arith.constant 0 : index
    %c0_12 = arith.constant 0 : index
    %15 = vector.load %arg6[%c0_11, %c0_12] : memref<512x256xf32, #tpu.memory_space<vmem>>, vector<512x256xf32>
    tpu.vector_store %arg6[%c0_11, %c0_12], %14 {strides = array<i32>} : memref<512x256xf32, #tpu.memory_space<vmem>>, vector<512x256xf32>,
    return
  }
  func.func @transform_0(%arg0: i32) -> (i32, i32) {
    %c0_i32 = arith.constant 0 : i32
    %c0_i32_0 = arith.constant 0 : i32
    return %arg0, %c0_i32 : i32, i32
  }
  func.func @transform_1(%arg0: i32) -> (i32, i32) {
    %c0_i32 = arith.constant 0 : i32
    %c0_i32_0 = arith.constant 0 : i32
    %c0_i32_1 = arith.constant 0 : i32
    return %c0_i32, %c0_i32_0 : i32, i32
  }
  func.func @transform_2(%arg0: i32) -> (i32, i32) {
    %c0_i32 = arith.constant 0 : i32
    %c0_i32_0 = arith.constant 0 : i32
    %c0_i32_1 = arith.constant 0 : i32
    return %c0_i32, %c0_i32_0 : i32, i32
  }
  func.func @transform_3(%arg0: i32) -> (i32, i32) {
    %c0_i32 = arith.constant 0 : i32
    %c0_i32_0 = arith.constant 0 : i32
    %c0_i32_1 = arith.constant 0 : i32
    return %c0_i32, %c0_i32_0 : i32, i32
  }
  func.func @transform_4(%arg0: i32) -> (i32, i32) {
    %c0_i32 = arith.constant 0 : i32
    %c0_i32_0 = arith.constant 0 : i32
    %c0_i32_1 = arith.constant 0 : i32
    return %c0_i32, %c0_i32_0 : i32, i32
  }
  func.func @transform_5(%arg0: i32) -> (i32, i32) {
    %c0_i32 = arith.constant 0 : i32
    %c0_i32_0 = arith.constant 0 : i32
    return %arg0, %c0_i32 : i32, i32
  }
}

module attributes {stable_mosaic.version = 11 : i64} {
  func.func @_box_predictor_kernel(%arg0: i32, %arg1: memref<512x36xbf16, #tpu.memory_space<vmem>>, %arg2: memref<36x32xbf16, #tpu.memory_space<vmem>>, %arg3: memref<1x32xf32, #tpu.memory_space<vmem>>, %arg4: memref<32x256xbf16, #tpu.memory_space<vmem>>, %arg5: memref<1x256xf32, #tpu.memory_space<vmem>>, %arg6: memref<512x256xf32, #tpu.memory_space<vmem>>) attributes {dimension_semantics = [#tpu.dimension_semantics<parallel>], iteration_bounds = array<i64: 1>, scalar_prefetch = 0 : i64, scratch_operands = 0 : i64, tpu.core_type = #tpu.core_type<tc>, window_params = [{transform_indices = @transform_0, window_bounds = array<i64: 512, 36>}, {pipeline_mode = #tpu.pipeline_mode<synchronous>, transform_indices = @transform_1, window_bounds = array<i64: 36, 32>}, {pipeline_mode = #tpu.pipeline_mode<synchronous>, transform_indices = @transform_2, window_bounds = array<i64: 1, 32>}, {pipeline_mode = #tpu.pipeline_mode<synchronous>, transform_indices = @transform_3, window_bounds = array<i64: 32, 256>}, {pipeline_mode = #tpu.pipeline_mode<synchronous>, transform_indices = @transform_4, window_bounds = array<i64: 1, 256>}, {transform_indices = @transform_5, window_bounds = array<i64: 512, 256>}]} {
    %c0 = arith.constant 0 : index
    %c0_0 = arith.constant 0 : index
    %0 = vector.load %arg1[%c0, %c0_0] : memref<512x36xbf16, #tpu.memory_space<vmem>>, vector<512x36xbf16>
    %c0_1 = arith.constant 0 : index
    %c0_2 = arith.constant 0 : index
    %1 = vector.load %arg2[%c0_1, %c0_2] : memref<36x32xbf16, #tpu.memory_space<vmem>>, vector<36x32xbf16>
    %cst = arith.constant dense<0.000000e+00> : vector<512x32xf32>
    %2 = tpu.matmul %0, %1, %cst {dimension_numbers = #tpu.dot_dimension_numbers<[1], [0], [0], [1], [0, 0, 1, 1], [], []>} : vector<512x36xbf16>, vector<36x32xbf16>, vector<512x32xf32> -> vector<512x32xf32>
    %c0_3 = arith.constant 0 : index
    %c0_4 = arith.constant 0 : index
    %3 = vector.load %arg3[%c0_3, %c0_4] : memref<1x32xf32, #tpu.memory_space<vmem>>, vector<1x32xf32>
    %4 = vector.broadcast %3 : vector<1x32xf32> to vector<512x32xf32>
    %5 = arith.addf %2, %4 : vector<512x32xf32>
    %cst_5 = arith.constant 1.000000e-01 : f32
    %6 = vector.broadcast %cst_5 : f32 to vector<512x32xf32>
    %7 = arith.mulf %6, %5 : vector<512x32xf32>
    %8 = arith.maximumf %5, %7 : vector<512x32xf32>
    %9 = arith.truncf %8 : vector<512x32xf32> to vector<512x32xbf16>
    %c0_6 = arith.constant 0 : index
    %c0_7 = arith.constant 0 : index
    %10 = vector.load %arg4[%c0_6, %c0_7] : memref<32x256xbf16, #tpu.memory_space<vmem>>, vector<32x256xbf16>
    %cst_8 = arith.constant dense<0.000000e+00> : vector<512x256xf32>
    %11 = tpu.matmul %9, %10, %cst_8 {dimension_numbers = #tpu.dot_dimension_numbers<[1], [0], [0], [1], [0, 0, 1, 1], [], []>} : vector<512x32xbf16>, vector<32x256xbf16>, vector<512x256xf32> -> vector<512x256xf32>
    %c0_9 = arith.constant 0 : index
    %c0_10 = arith.constant 0 : index
    %12 = vector.load %arg5[%c0_9, %c0_10] : memref<1x256xf32, #tpu.memory_space<vmem>>, vector<1x256xf32>
    %13 = vector.broadcast %12 : vector<1x256xf32> to vector<512x256xf32>
    %14 = arith.addf %11, %13 : vector<512x256xf32>
    %c0_11 = arith.constant 0 : index
    %c0_12 = arith.constant 0 : index
    %15 = vector.load %arg6[%c0_11, %c0_12] : memref<512x256xf32, #tpu.memory_space<vmem>>, vector<512x256xf32>
    tpu.vector_store %arg6[%c0_11, %c0_12], %14 {strides = array<i32>} : memref<512x256xf32, #tpu.memory_space<vmem>>, vector<512x256xf32>,
    return
  }
  func.func @transform_0(%arg0: i32) -> (i32, i32) {
    %c0_i32 = arith.constant 0 : i32
    %c0_i32_0 = arith.constant 0 : i32
    return %arg0, %c0_i32 : i32, i32
  }
  func.func @transform_1(%arg0: i32) -> (i32, i32) {
    %c0_i32 = arith.constant 0 : i32
    %c0_i32_0 = arith.constant 0 : i32
    %c0_i32_1 = arith.constant 0 : i32
    return %c0_i32, %c0_i32_0 : i32, i32
  }
  func.func @transform_2(%arg0: i32) -> (i32, i32) {
    %c0_i32 = arith.constant 0 : i32
    %c0_i32_0 = arith.constant 0 : i32
    %c0_i32_1 = arith.constant 0 : i32
    return %c0_i32, %c0_i32_0 : i32, i32
  }
  func.func @transform_3(%arg0: i32) -> (i32, i32) {
    %c0_i32 = arith.constant 0 : i32
    %c0_i32_0 = arith.constant 0 : i32
    %c0_i32_1 = arith.constant 0 : i32
    return %c0_i32, %c0_i32_0 : i32, i32
  }
  func.func @transform_4(%arg0: i32) -> (i32, i32) {
    %c0_i32 = arith.constant 0 : i32
    %c0_i32_0 = arith.constant 0 : i32
    %c0_i32_1 = arith.constant 0 : i32
    return %c0_i32, %c0_i32_0 : i32, i32
  }
  func.func @transform_5(%arg0: i32) -> (i32, i32) {
    %c0_i32 = arith.constant 0 : i32
    %c0_i32_0 = arith.constant 0 : i32
    return %arg0, %c0_i32 : i32, i32
  }
}

</mosaic_0001>

<bundles_post_ra>
// kernel: _forward.1
= control target key start
LH: loop header
LB: loop body
LE: loop exit
PB: predicated region body
PF: predicated region fallthrough
CT: control target
= control target key end

     0   :  { %vm367_vm0 = vcmask 1041408   ;;  %s2139_s0 = inlined_call_operand.vmem [shape: bf16[512,36], index: 0, kind: input, shape index: {}]   ;;  %s2140_s1 = inlined_call_operand.vmem [shape: bf16[36,32], index: 1, kind: input, shape index: {}]   ;;  %s2141_s2 = inlined_call_operand.vmem [shape: f32[1,32], index: 2, kind: input, shape index: {}]   ;;  %s2142_s3 = inlined_call_operand.vmem [shape: bf16[32,256], index: 3, kind: input, shape index: {}]   ;;  %s2143_s4 = inlined_call_operand.vmem [shape: f32[1,256], index: 4, kind: input, shape index: {}]   ;;  %s2144_s5 = inlined_call_operand.hbm [shape: f32[512,256], index: 5, kind: output, shape index: {}]  }
   0x1   :  { %v90_v0 = vld [vmem:[%s2140_s1 + $0x10] sm:$0x3] }
   0x2   :  { %v264_v1 = vunpack.c.l.b16 %v90_v0 }
   0x3   :  { %10 = vsyncpa [#allocation3], 0  ;;  %v1592_v4 = vld [vmem:[%s2140_s1 + $0x8] sm:$0xff]  ;;  %v1591_v5 = vld [vmem:[%s2140_s1] sm:$0xff]  ;;  %vm270_vm1 = vcmask 293888   ;;  %vm730_vm2 = vcmask 261120  }
   0x4   :  { %v267_v2 = vpack.c.b16 %v264_v1, %v264_v1  ;;  %v1559_v6 = vld [vmem:[%s2139_s0] sm:$0xff]  ;;  %v1560_v8 = vld [vmem:[%s2139_s0 + $0x8] sm:$0xff]  ;;  %v1561_v10 = vld [vmem:[%s2139_s0 + $0x10] sm:$0xff]  ;;  %s1299_s30 = sshll.u32 %s2144_s5, 4  ;;  %s1636_s6 = smov 256   ;;  %s1300_s30 = int_to_ptr.hbm [resolvable:$true] %s1299_s30 }
   0x5   :  { %v1583_v7 = vld [vmem:[%s2139_s0 + $0xc0] sm:$0xff]  ;;  %v1584_v9 = vld [vmem:[%s2139_s0 + $0xc8] sm:$0xff]  ;;  %v1585_v11 = vld [vmem:[%s2139_s0 + $0xd0] sm:$0xff]  ;;  %s1637_s7 = smov 16  }
   0x6   :  { %v369_v3 = vsel %vm367_vm0, %v267_v2, 0  ;;  %v1562_v12 = vld [vmem:[%s2139_s0 + $0x18] sm:$0xff]  ;;  %v1563_v14 = vld [vmem:[%s2139_s0 + $0x20] sm:$0xff]  ;;  %v1564_v16 = vld [vmem:[%s2139_s0 + $0x28] sm:$0xff] }
   0x7   :  { %376 = vmatpush.bf16.msra.mxu0 %v369_v3  ;;  %1597 = vmatpush.bf16.msra.mxu3 %v369_v3  ;;  %v1586_v13 = vld [vmem:[%s2139_s0 + $0xd8] sm:$0xff]  ;;  %v1587_v15 = vld [vmem:[%s2139_s0 + $0xe0] sm:$0xff]  ;;  %v1588_v17 = vld [vmem:[%s2139_s0 + $0xe8] sm:$0xff] }
   0x8   :  { %v1565_v18 = vld [vmem:[%s2139_s0 + $0x30] sm:$0xff]  ;;  %v1596_v21 = vld [vmem:[%s2142_s3 + $0x14] sm:$0xf0]  ;;  %v1491_v24 = vld [vmem:[%s2142_s3 + $0x18] sm:$0xf0] }
   0x9   :  { %v1589_v19 = vld [vmem:[%s2139_s0 + $0xf0] sm:$0xff]  ;;  %v1481_v26 = vld [vmem:[%s2142_s3] sm:$0xf]  ;;  %v1594_v27 = vld [vmem:[%s2142_s3 + $0x4] sm:$0xf0] }
   0xa   :  { %v1489_v20 = vld [vmem:[%s2142_s3 + $0x10] sm:$0xf]  ;;  %v1595_v22 = vld [vmem:[%s2142_s3 + $0x14] sm:$0xf]  ;;  %v1593_v28 = vld [vmem:[%s2142_s3 + $0x4] sm:$0xf]  ;;  %v1482_v29 = vor.u32 %v1594_v27, %v1481_v26 }
   0xb   :  { %377 = vmatpush.bf16.msra.mxu0 %v1592_v4  ;;  %1598 = vmatpush.bf16.msra.mxu3 %v1592_v4  ;;  %v1490_v23 = vor.u32 %v1596_v21, %v1489_v20  ;;  %v1494_v25 = vor.u32 %v1595_v22, %v1491_v24  ;;  %v1483_v30 = vld [vmem:[%s2142_s3 + $0x8] sm:$0xf0]  ;;  %v1566_v32 = vld [vmem:[%s2139_s0 + $0x38] sm:$0xff]  ;;  %v1567_v34 = vld [vmem:[%s2139_s0 + $0x40] sm:$0xff] }
   0xc   :  { %v1486_v31 = vor.u32 %v1593_v28, %v1483_v30  ;;  %v1590_v33 = vld [vmem:[%s2139_s0 + $0xf8] sm:$0xff]  ;;  %v1771_v36 = vld [vmem:[%s2141_s2] ss:$0 sm:$0xff]  ;;  %v1568_v47 = vld [vmem:[%s2139_s0 + $0x48] sm:$0xff] }
   0xd   :  { %833 = vmatpush.bf16.msra.mxu1 %v1490_v23  ;;  %1002 = vmatpush.bf16.msra.mxu2 %v1494_v25  ;;  %v1569_v61 = vld [vmem:[%s2139_s0 + $0x50] sm:$0xff] }
   0xf   :  { %378 = vmatpush.bf16.msra.mxu0 %v1591_v5  ;;  %1599 = vmatpush.bf16.msra.mxu3 %v1591_v5 }
  0x11   :  { %834 = vmatpush.bf16.msra.mxu1 %v1482_v29  ;;  %1003 = vmatpush.bf16.msra.mxu2 %v1486_v31 }
  0x12   :  { %1447 = vmatmul.msk.bf16.vlgmr.msra.gmra.mxu0 %vm270_vm1, %v1559_v6  ;;  %1471 = vmatmul.msk.bf16.vlgmr.msra.gmra.mxu3 %vm270_vm1, %v1583_v7 }
  0x13   :  { %1600 = vmatpush.bf16.msrb.mxu3 %v1490_v23 }
  0x17   :  { %1601 = vmatpush.bf16.msrb.mxu3 %v1482_v29 }
  0x1b   :  { %1602 = vmatpush.bf16.msra.mxu3 %v1494_v25 }
  0x1f   :  { %1603 = vmatpush.bf16.msra.mxu3 %v1486_v31 }
  0x22   :  { %1448 = vmatmul.msk.bf16.gmra.mxu0 %vm270_vm1, %v1560_v8  ;;  %1472 = vmatmul.msk.bf16.gmra.mxu3 %vm270_vm1, %v1584_v9 }
  0x32   :  { %1449 = vmatmul.msk.bf16.gmra.mxu0 %vm270_vm1, %v1561_v10  ;;  %1473 = vmatmul.msk.bf16.gmra.mxu3 %vm270_vm1, %v1585_v11 }
  0x42   :  { %1450 = vmatmul.msk.bf16.gmra.mxu0 %vm270_vm1, %v1562_v12  ;;  %1474 = vmatmul.msk.bf16.gmra.mxu3 %vm270_vm1, %v1586_v13 }
  0x52   :  { %1451 = vmatmul.msk.bf16.gmra.mxu0 %vm270_vm1, %v1563_v14  ;;  %1475 = vmatmul.msk.bf16.gmra.mxu3 %vm270_vm1, %v1587_v15 }
  0x62   :  { %1452 = vmatmul.msk.bf16.gmra.mxu0 %vm270_vm1, %v1564_v16  ;;  %1476 = vmatmul.msk.bf16.gmra.mxu3 %vm270_vm1, %v1588_v17  ;;  %v1570_v16 = vld [vmem:[%s2139_s0 + $0x58] sm:$0xff] }
  0x72   :  { %1453 = vmatmul.msk.bf16.gmra.mxu0 %vm270_vm1, %v1565_v18  ;;  %1477 = vmatmul.msk.bf16.gmra.mxu3 %vm270_vm1, %v1589_v19 }
  0x82   :  { %1454 = vmatmul.msk.bf16.gmra.mxu0 %vm270_vm1, %v1566_v32  ;;  %1478 = vmatmul.msk.bf16.gmra.mxu3 %vm270_vm1, %v1590_v33 }
  0x8f   :  { %v380_v35 = vpop.f32.mrf.mxu0 }
  0x90   :  { %v381_v37 = vadd.f32 %v1771_v36, %v380_v35  ;;  %v1571_v35 = vld [vmem:[%s2139_s0 + $0x60] sm:$0xff] }
  0x92   :  { %1455 = vmatmul.msk.bf16.gmra.mxu0 %vm270_vm1, %v1567_v34  ;;  %v540_v40 = vmul.f32 0.1, %v381_v37 }
  0x94   :  { %v604_v43 = vmax.f32 %v381_v37, %v540_v40 }
  0x95   :  { %v1775_v38 = vpop.f32.mrf.mxu3 }
  0x97   :  { %v382_v39 = vpop.f32.mrf.mxu0 }
  0x98   :  { %v383_v41 = vadd.f32 %v1771_v36, %v382_v39 }
  0x9a   :  { %v541_v42 = vmul.f32 0.1, %v383_v41 }
  0x9c   :  { %v605_v44 = vmax.f32 %v383_v41, %v541_v42 }
  0x9d   :  { %v1778_v45 = vpop.f32.mrf.mxu3 }
  0x9e   :  { %v668_v46 = vpack.c.bf16 %v605_v44, %v604_v43 }
  0x9f   :  { %v385_v48 = vpop.f32.mrf.mxu0 }
  0xa0   :  { %1495 = vmatmul.msk.bf16.vlgmr.msra.gmra.mxu1 %vm730_vm2, %v668_v46  ;;  %1527 = vmatmul.msk.bf16.vlgmr.msra.gmra.mxu2 %vm730_vm2, %v668_v46  ;;  %v386_v49 = vadd.f32 %v1771_v36, %v385_v48 }
  0xa2   :  { %1456 = vmatmul.msk.bf16.gmra.mxu0 %vm270_vm1, %v1568_v47  ;;  %v542_v52 = vmul.f32 0.1, %v386_v49 }
  0xa4   :  { %v606_v56 = vmax.f32 %v386_v49, %v542_v52 }
  0xa5   :  { %v505_v50 = vpop.f32.mrf.mxu3 }
  0xa6   :  { %v506_v54 = vadd.f32 %v1771_v36, %v505_v50 }
  0xa7   :  { %v387_v51 = vpop.f32.mrf.mxu0 }
  0xa8   :  { %v388_v53 = vadd.f32 %v1771_v36, %v387_v51  ;;  %v590_v58 = vmul.f32 0.1, %v506_v54 }
  0xaa   :  { %v543_v55 = vmul.f32 0.1, %v388_v53  ;;  %v654_v0 = vmax.f32 %v506_v54, %v590_v58 }
  0xac   :  { %v607_v57 = vmax.f32 %v388_v53, %v543_v55 }
  0xad   :  { %v507_v59 = vpop.f32.mrf.mxu3 }
  0xae   :  { %v669_v60 = vpack.c.bf16 %v607_v57, %v606_v56  ;;  %v508_v62 = vadd.f32 %v1771_v36, %v507_v59  ;;  %v1572_v57 = vld [vmem:[%s2139_s0 + $0x68] sm:$0xff] }
  0xaf   :  { %v390_v63 = vpop.f32.mrf.mxu0 }
  0xb0   :  { %1496 = vmatmul.msk.bf16.gmra.mxu1 %vm730_vm2, %v669_v60  ;;  %1528 = vmatmul.msk.bf16.gmra.mxu2 %vm730_vm2, %v669_v60  ;;  %v591_v1 = vmul.f32 0.1, %v508_v62  ;;  %v391_v3 = vadd.f32 %v1771_v36, %v390_v63 }
  0xb2   :  { %1457 = vmatmul.msk.bf16.gmra.mxu0 %vm270_vm1, %v1569_v61  ;;  %v655_v2 = vmax.f32 %v508_v62, %v591_v1  ;;  %v544_v7 = vmul.f32 0.1, %v391_v3 }
  0xb4   :  { %v1797_v4 = vpack.c.bf16 %v655_v2, %v654_v0  ;;  %v608_v11 = vmax.f32 %v391_v3, %v544_v7 }
  0xb5   :  { %v510_v5 = vpop.f32.mrf.mxu3 }
  0xb6   :  { %1520 = vmatmul.msk.bf16.vlgmr.msrb.gmra.mxu3 %vm730_vm2, %v1797_v4  ;;  %v511_v9 = vadd.f32 %v1771_v36, %v510_v5 }
  0xb7   :  { %v392_v6 = vpop.f32.mrf.mxu0 }
  0xb8   :  { %v393_v8 = vadd.f32 %v1771_v36, %v392_v6  ;;  %v592_v13 = vmul.f32 0.1, %v511_v9 }
  0xba   :  { %v545_v10 = vmul.f32 0.1, %v393_v8  ;;  %v656_v19 = vmax.f32 %v511_v9, %v592_v13  ;;  %v1573_v13 = vld [vmem:[%s2139_s0 + $0x70] sm:$0xff] }
  0xbc   :  { %v609_v12 = vmax.f32 %v393_v8, %v545_v10 }
  0xbd   :  { %v512_v14 = vpop.f32.mrf.mxu3 }
  0xbe   :  { %v670_v15 = vpack.c.bf16 %v609_v12, %v608_v11  ;;  %v513_v17 = vadd.f32 %v1771_v36, %v512_v14 }
  0xbf   :  { %v395_v18 = vpop.f32.mrf.mxu0 }
  0xc0   :  { %1497 = vmatmul.msk.bf16.gmra.mxu1 %vm730_vm2, %v670_v15  ;;  %1529 = vmatmul.msk.bf16.gmra.mxu2 %vm730_vm2, %v670_v15  ;;  %v593_v20 = vmul.f32 0.1, %v513_v17  ;;  %v396_v22 = vadd.f32 %v1771_v36, %v395_v18 }
  0xc2   :  { %1458 = vmatmul.msk.bf16.gmra.mxu0 %vm270_vm1, %v1570_v16  ;;  %v657_v21 = vmax.f32 %v513_v17, %v593_v20  ;;  %v546_v26 = vmul.f32 0.1, %v396_v22 }
  0xc4   :  { %v1811_v23 = vpack.c.bf16 %v657_v21, %v656_v19  ;;  %v610_v30 = vmax.f32 %v396_v22, %v546_v26 }
  0xc5   :  { %v515_v24 = vpop.f32.mrf.mxu3 }
  0xc6   :  { %1521 = vmatmul.msk.bf16.gmra.mxu3 %vm730_vm2, %v1811_v23  ;;  %v516_v28 = vadd.f32 %v1771_v36, %v515_v24 }
  0xc7   :  { %v397_v25 = vpop.f32.mrf.mxu0 }
  0xc8   :  { %v398_v27 = vadd.f32 %v1771_v36, %v397_v25  ;;  %v594_v32 = vmul.f32 0.1, %v516_v28 }
  0xca   :  { %v547_v29 = vmul.f32 0.1, %v398_v27  ;;  %v658_v40 = vmax.f32 %v516_v28, %v594_v32 }
  0xcc   :  { %v611_v31 = vmax.f32 %v398_v27, %v547_v29 }
  0xcd   :  { %v517_v33 = vpop.f32.mrf.mxu3 }
  0xce   :  { %v671_v34 = vpack.c.bf16 %v611_v31, %v610_v30  ;;  %v518_v37 = vadd.f32 %v1771_v36, %v517_v33  ;;  %v1574_v33 = vld [vmem:[%s2139_s0 + $0x78] sm:$0xff] }
  0xcf   :  { %v400_v39 = vpop.f32.mrf.mxu0 }
  0xd0   :  { %1498 = vmatmul.msk.bf16.gmra.mxu1 %vm730_vm2, %v671_v34  ;;  %1530 = vmatmul.msk.bf16.gmra.mxu2 %vm730_vm2, %v671_v34  ;;  %v595_v41 = vmul.f32 0.1, %v518_v37  ;;  %v401_v43 = vadd.f32 %v1771_v36, %v400_v39 }
  0xd2   :  { %1459 = vmatmul.msk.bf16.gmra.mxu0 %vm270_vm1, %v1571_v35  ;;  %v659_v42 = vmax.f32 %v518_v37, %v595_v41  ;;  %v548_v48 = vmul.f32 0.1, %v401_v43 }
  0xd4   :  { %v1825_v44 = vpack.c.bf16 %v659_v42, %v658_v40  ;;  %v612_v52 = vmax.f32 %v401_v43, %v548_v48 }
  0xd5   :  { %v520_v46 = vpop.f32.mrf.mxu3 }
  0xd6   :  { %1522 = vmatmul.msk.bf16.gmra.mxu3 %vm730_vm2, %v1825_v44  ;;  %v521_v50 = vadd.f32 %v1771_v36, %v520_v46 }
  0xd7   :  { %v402_v47 = vpop.f32.mrf.mxu0 }
  0xd8   :  { %v403_v49 = vadd.f32 %v1771_v36, %v402_v47  ;;  %v596_v54 = vmul.f32 0.1, %v521_v50 }
  0xda   :  { %v549_v51 = vmul.f32 0.1, %v403_v49  ;;  %v660_v60 = vmax.f32 %v521_v50, %v596_v54 }
  0xdc   :  { %v613_v53 = vmax.f32 %v403_v49, %v549_v51 }
  0xdd   :  { %v522_v55 = vpop.f32.mrf.mxu3 }
  0xde   :  { %v672_v56 = vpack.c.bf16 %v613_v53, %v612_v52  ;;  %v523_v58 = vadd.f32 %v1771_v36, %v522_v55 }
  0xdf   :  { %v405_v59 = vpop.f32.mrf.mxu0 }
  0xe0   :  { %1499 = vmatmul.msk.bf16.gmra.mxu1 %vm730_vm2, %v672_v56  ;;  %1531 = vmatmul.msk.bf16.gmra.mxu2 %vm730_vm2, %v672_v56  ;;  %v597_v61 = vmul.f32 0.1, %v523_v58  ;;  %v406_v63 = vadd.f32 %v1771_v36, %v405_v59  ;;  %v1575_v56 = vld [vmem:[%s2139_s0 + $0x80] sm:$0xff] }
  0xe2   :  { %1460 = vmatmul.msk.bf16.gmra.mxu0 %vm270_vm1, %v1572_v57  ;;  %v661_v62 = vmax.f32 %v523_v58, %v597_v61  ;;  %v550_v3 = vmul.f32 0.1, %v406_v63 }
  0xe4   :  { %v1839_v0 = vpack.c.bf16 %v661_v62, %v660_v60  ;;  %v614_v8 = vmax.f32 %v406_v63, %v550_v3 }
  0xe5   :  { %v525_v1 = vpop.f32.mrf.mxu3 }
  0xe6   :  { %1523 = vmatmul.msk.bf16.gmra.mxu3 %vm730_vm2, %v1839_v0  ;;  %v526_v6 = vadd.f32 %v1771_v36, %v525_v1 }
  0xe7   :  { %v407_v2 = vpop.f32.mrf.mxu0 }
  0xe8   :  { %v408_v5 = vadd.f32 %v1771_v36, %v407_v2  ;;  %v598_v10 = vmul.f32 0.1, %v526_v6  ;;  %v704_v2 = vld [vmem:[%s2143_s4] sm:$0x3] }
  0xea   :  { %v551_v7 = vmul.f32 0.1, %v408_v5  ;;  %v662_v16 = vmax.f32 %v526_v6, %v598_v10 }
  0xec   :  { %v615_v9 = vmax.f32 %v408_v5, %v551_v7  ;;  %v1889_v7 = vperm.slane %v704_v2, 0 }
  0xed   :  { %v527_v11 = vpop.f32.mrf.mxu3 }
  0xee   :  { %v673_v12 = vpack.c.bf16 %v615_v9, %v614_v8  ;;  %v528_v14 = vadd.f32 %v1771_v36, %v527_v11 }
  0xef   :  { %v410_v15 = vpop.f32.mrf.mxu0 }
  0xf0   :  { %1500 = vmatmul.msk.bf16.gmra.mxu1 %vm730_vm2, %v673_v12  ;;  %1532 = vmatmul.msk.bf16.gmra.mxu2 %vm730_vm2, %v673_v12  ;;  %v599_v17 = vmul.f32 0.1, %v528_v14  ;;  %v411_v19 = vadd.f32 %v1771_v36, %v410_v15  ;;  %v1897_v15 = vperm.slane %v704_v2, 1 }
  0xf2   :  { %1461 = vmatmul.msk.bf16.gmra.mxu0 %vm270_vm1, %v1573_v13  ;;  %v663_v18 = vmax.f32 %v528_v14, %v599_v17  ;;  %v552_v24 = vmul.f32 0.1, %v411_v19  ;;  %v1576_v13 = vld [vmem:[%s2139_s0 + $0x88] sm:$0xff] }
  0xf4   :  { %v1853_v20 = vpack.c.bf16 %v663_v18, %v662_v16  ;;  %v616_v28 = vmax.f32 %v411_v19, %v552_v24 }
  0xf5   :  { %v530_v21 = vpop.f32.mrf.mxu3 }
  0xf6   :  { %1524 = vmatmul.msk.bf16.gmra.mxu3 %vm730_vm2, %v1853_v20  ;;  %v531_v26 = vadd.f32 %v1771_v36, %v530_v21 }
  0xf7   :  { %v412_v22 = vpop.f32.mrf.mxu0 }
  0xf8   :  { %v413_v25 = vadd.f32 %v1771_v36, %v412_v22  ;;  %v600_v30 = vmul.f32 0.1, %v531_v26 }
  0xfa   :  { %v553_v27 = vmul.f32 0.1, %v413_v25  ;;  %v664_v37 = vmax.f32 %v531_v26, %v600_v30 }
  0xfc   :  { %v617_v29 = vmax.f32 %v413_v25, %v553_v27 }
  0xfd   :  { %v532_v31 = vpop.f32.mrf.mxu3 }
  0xfe   :  { %v674_v32 = vpack.c.bf16 %v617_v29, %v616_v28  ;;  %v533_v34 = vadd.f32 %v1771_v36, %v532_v31 }
  0xff   :  { %v415_v35 = vpop.f32.mrf.mxu0 }
 0x100   :  { %1501 = vmatmul.msk.bf16.gmra.mxu1 %vm730_vm2, %v674_v32  ;;  %1533 = vmatmul.msk.bf16.gmra.mxu2 %vm730_vm2, %v674_v32  ;;  %v601_v39 = vmul.f32 0.1, %v533_v34  ;;  %v416_v41 = vadd.f32 %v1771_v36, %v415_v35 }
 0x102   :  { %1462 = vmatmul.msk.bf16.gmra.mxu0 %vm270_vm1, %v1574_v33  ;;  %v665_v40 = vmax.f32 %v533_v34, %v601_v39  ;;  %v554_v47 = vmul.f32 0.1, %v416_v41 }
 0x104   :  { %v1867_v42 = vpack.c.bf16 %v665_v40, %v664_v37  ;;  %v618_v51 = vmax.f32 %v416_v41, %v554_v47 }
 0x105   :  { %v535_v43 = vpop.f32.mrf.mxu3 }
 0x106   :  { %1525 = vmatmul.msk.bf16.gmra.mxu3 %vm730_vm2, %v1867_v42  ;;  %v536_v49 = vadd.f32 %v1771_v36, %v535_v43 }
 0x107   :  { %v417_v46 = vpop.f32.mrf.mxu0 }
 0x108   :  { %v418_v48 = vadd.f32 %v1771_v36, %v417_v46  ;;  %v602_v53 = vmul.f32 0.1, %v536_v49 }
 0x10a   :  { %v555_v50 = vmul.f32 0.1, %v418_v48  ;;  %v666_v59 = vmax.f32 %v536_v49, %v602_v53 }
 0x10c   :  { %v619_v52 = vmax.f32 %v418_v48, %v555_v50 }
 0x10d   :  { %v537_v54 = vpop.f32.mrf.mxu3 }
 0x10e   :  { %v675_v55 = vpack.c.bf16 %v619_v52, %v618_v51  ;;  %v538_v57 = vadd.f32 %v1771_v36, %v537_v54 }
 0x10f   :  { %v420_v58 = vpop.f32.mrf.mxu0 }
 0x110   :  { %1502 = vmatmul.msk.bf16.gmra.mxu1 %vm730_vm2, %v675_v55  ;;  %1534 = vmatmul.msk.bf16.gmra.mxu2 %vm730_vm2, %v675_v55  ;;  %v603_v60 = vmul.f32 0.1, %v538_v57  ;;  %v421_v62 = vadd.f32 %v1771_v36, %v420_v58 }
 0x112   :  { %1463 = vmatmul.msk.bf16.gmra.mxu0 %vm270_vm1, %v1575_v56  ;;  %v667_v61 = vmax.f32 %v538_v57, %v603_v60  ;;  %v556_v3 = vmul.f32 0.1, %v421_v62  ;;  %v1578_v57 = vld [vmem:[%s2139_s0 + $0x98] sm:$0xff] }
 0x114   :  { %v1881_v63 = vpack.c.bf16 %v667_v61, %v666_v59  ;;  %v620_v8 = vmax.f32 %v421_v62, %v556_v3 }
 0x116   :  { %1526 = vmatmul.msk.bf16.gmra.mxu3 %vm730_vm2, %v1881_v63 }
 0x117   :  { %v422_v1 = vpop.f32.mrf.mxu0 }
 0x118   :  { %v423_v5 = vadd.f32 %v1771_v36, %v422_v1 }
 0x11a   :  { %v557_v6 = vmul.f32 0.1, %v423_v5 }
 0x11c   :  { %v621_v9 = vmax.f32 %v423_v5, %v557_v6 }
 0x11d   :  { %v836_v10 = vpop.f32.mrf.mxu1 }
 0x11e   :  { %v837_v11 = vadd.f32 %v836_v10, %v1889_v7  ;;  %v676_v12 = vpack.c.bf16 %v621_v9, %v620_v8 }
 0x11f   :  { %v425_v14 = vpop.f32.mrf.mxu0 }
 0x120   :  { %1165 = vst [vmem:[#allocation2] sm:$0xff] %v837_v11  ;;  %1503 = vmatmul.msk.bf16.gmra.mxu1 %vm730_vm2, %v676_v12  ;;  %1535 = vmatmul.msk.bf16.gmra.mxu2 %vm730_vm2, %v676_v12  ;;  %v426_v17 = vadd.f32 %v1771_v36, %v425_v14 }
 0x122   :  { %1464 = vmatmul.msk.bf16.gmra.mxu0 %vm270_vm1, %v1576_v13  ;;  %v558_v24 = vmul.f32 0.1, %v426_v17 }
 0x123   :  { %v1005_v16 = vpop.f32.mrf.mxu2 }
 0x124   :  { %v1006_v18 = vadd.f32 %v1005_v16, %v1897_v15  ;;  %v622_v28 = vmax.f32 %v426_v17, %v558_v24 }
 0x125   :  { %v838_v19 = vpop.f32.mrf.mxu1 }
 0x126   :  { %1166 = vst [vmem:[#allocation2 + $0x8] sm:$0xff] %v1006_v18  ;;  %v839_v21 = vadd.f32 %v838_v19, %v1889_v7  ;;  %1552 = vmatmul.msk.bf16.vlgmr.msra.gmra.mxu3 %vm730_vm2, %v1797_v4  ;;  %v1577_v4 = vld [vmem:[%s2139_s0 + $0x90] sm:$0xff]  ;;  %v1579_v19 = vld [vmem:[%s2139_s0 + $0xa0] sm:$0xff] }
 0x127   :  { %v427_v22 = vpop.f32.mrf.mxu0 }
 0x128   :  { %1167 = vst [vmem:[#allocation2 + $0x10] sm:$0xff] %v839_v21  ;;  %v428_v25 = vadd.f32 %v1771_v36, %v427_v22 }
 0x12a   :  { %v559_v26 = vmul.f32 0.1, %v428_v25 }
 0x12b   :  { %v1007_v27 = vpop.f32.mrf.mxu2 }
 0x12c   :  { %v623_v29 = vmax.f32 %v428_v25, %v559_v26  ;;  %v1008_v30 = vadd.f32 %v1007_v27, %v1897_v15 }
 0x12d   :  { %v841_v31 = vpop.f32.mrf.mxu1 }
 0x12e   :  { %1168 = vst [vmem:[#allocation2 + $0x18] sm:$0xff] %v1008_v30  ;;  %v842_v32 = vadd.f32 %v841_v31, %v1889_v7  ;;  %v677_v33 = vpack.c.bf16 %v623_v29, %v622_v28 }
 0x12f   :  { %v430_v34 = vpop.f32.mrf.mxu0 }
 0x130   :  { %1169 = vst [vmem:[#allocation2 + $0x20] sm:$0xff] %v842_v32  ;;  %1504 = vmatmul.msk.bf16.gmra.mxu1 %vm730_vm2, %v677_v33  ;;  %1536 = vmatmul.msk.bf16.gmra.mxu2 %vm730_vm2, %v677_v33  ;;  %v431_v37 = vadd.f32 %v1771_v36, %v430_v34 }
 0x132   :  { %1465 = vmatmul.msk.bf16.gmra.mxu0 %vm270_vm1, %v1577_v4  ;;  %v560_v46 = vmul.f32 0.1, %v431_v37 }
 0x133   :  { %v1010_v35 = vpop.f32.mrf.mxu2 }
 0x134   :  { %v1011_v39 = vadd.f32 %v1010_v35, %v1897_v15  ;;  %v624_v52 = vmax.f32 %v431_v37, %v560_v46  ;;  %v1580_v46 = vld [vmem:[%s2139_s0 + $0xa8] sm:$0xff] }
 0x135   :  { %v843_v40 = vpop.f32.mrf.mxu1 }
 0x136   :  { %1170 = vst [vmem:[#allocation2 + $0x28] sm:$0xff] %v1011_v39  ;;  %v844_v41 = vadd.f32 %v843_v40, %v1889_v7  ;;  %1553 = vmatmul.msk.bf16.gmra.mxu3 %vm730_vm2, %v1811_v23 }
 0x137   :  { %v432_v43 = vpop.f32.mrf.mxu0 }
 0x138   :  { %1171 = vst [vmem:[#allocation2 + $0x30] sm:$0xff] %v844_v41  ;;  %v433_v47 = vadd.f32 %v1771_v36, %v432_v43 }
 0x139   :  { %v961_v48 = vpop.f32.mrf.mxu3 }
 0x13a   :  { %v561_v49 = vmul.f32 0.1, %v433_v47  ;;  %v962_v50 = vadd.f32 %v961_v48, %v1889_v7 }
 0x13b   :  { %v1012_v51 = vpop.f32.mrf.mxu2 }
 0x13c   :  { %v625_v53 = vmax.f32 %v433_v47, %v561_v49  ;;  %v1013_v54 = vadd.f32 %v1012_v51, %v1897_v15  ;;  %1265 = vst [vmem:[#allocation2 + $0x320] sm:$0xff] %v962_v50 }
 0x13d   :  { %v846_v55 = vpop.f32.mrf.mxu1 }
 0x13e   :  { %1172 = vst [vmem:[#allocation2 + $0x38] sm:$0xff] %v1013_v54  ;;  %v847_v56 = vadd.f32 %v846_v55, %v1889_v7  ;;  %v678_v23 = vpack.c.bf16 %v625_v53, %v624_v52 }
 0x13f   :  { %v435_v58 = vpop.f32.mrf.mxu0 }
 0x140   :  { %1173 = vst [vmem:[#allocation2 + $0x40] sm:$0xff] %v847_v56  ;;  %1505 = vmatmul.msk.bf16.gmra.mxu1 %vm730_vm2, %v678_v23  ;;  %1537 = vmatmul.msk.bf16.gmra.mxu2 %vm730_vm2, %v678_v23  ;;  %v436_v62 = vadd.f32 %v1771_v36, %v435_v58 }
 0x141   :  { %v963_v59 = vpop.f32.mrf.mxu3 }
 0x142   :  { %1466 = vmatmul.msk.bf16.gmra.mxu0 %vm270_vm1, %v1578_v57  ;;  %v964_v60 = vadd.f32 %v963_v59, %v1889_v7  ;;  %v562_v6 = vmul.f32 0.1, %v436_v62 }
 0x143   :  { %v1015_v61 = vpop.f32.mrf.mxu2 }
 0x144   :  { %v1016_v1 = vadd.f32 %v1015_v61, %v1897_v15  ;;  %1267 = vst [vmem:[#allocation2 + $0x330] sm:$0xff] %v964_v60  ;;  %v626_v13 = vmax.f32 %v436_v62, %v562_v6 }
 0x145   :  { %v848_v2 = vpop.f32.mrf.mxu1 }
 0x146   :  { %1174 = vst [vmem:[#allocation2 + $0x48] sm:$0xff] %v1016_v1  ;;  %v849_v3 = vadd.f32 %v848_v2, %v1889_v7  ;;  %1554 = vmatmul.msk.bf16.gmra.mxu3 %vm730_vm2, %v1825_v44 }
 0x147   :  { %v437_v5 = vpop.f32.mrf.mxu0 }
 0x148   :  { %1175 = vst [vmem:[#allocation2 + $0x50] sm:$0xff] %v849_v3  ;;  %v438_v8 = vadd.f32 %v1771_v36, %v437_v5  ;;  %v1581_v5 = vld [vmem:[%s2139_s0 + $0xb0] sm:$0xff] }
 0x149   :  { %v966_v9 = vpop.f32.mrf.mxu3 }
 0x14a   :  { %v563_v10 = vmul.f32 0.1, %v438_v8  ;;  %v967_v11 = vadd.f32 %v966_v9, %v1889_v7 }
 0x14b   :  { %v1017_v12 = vpop.f32.mrf.mxu2 }
 0x14c   :  { %v627_v14 = vmax.f32 %v438_v8, %v563_v10  ;;  %v1018_v16 = vadd.f32 %v1017_v12, %v1897_v15  ;;  %1269 = vst [vmem:[#allocation2 + $0x340] sm:$0xff] %v967_v11 }
 0x14d   :  { %v851_v17 = vpop.f32.mrf.mxu1 }
 0x14e   :  { %1176 = vst [vmem:[#allocation2 + $0x58] sm:$0xff] %v1018_v16  ;;  %v852_v18 = vadd.f32 %v851_v17, %v1889_v7  ;;  %v679_v44 = vpack.c.bf16 %v627_v14, %v626_v13 }
 0x14f   :  { %v440_v21 = vpop.f32.mrf.mxu0 }
 0x150   :  { %1177 = vst [vmem:[#allocation2 + $0x60] sm:$0xff] %v852_v18  ;;  %1506 = vmatmul.msk.bf16.gmra.mxu1 %vm730_vm2, %v679_v44  ;;  %1538 = vmatmul.msk.bf16.gmra.mxu2 %vm730_vm2, %v679_v44  ;;  %v441_v26 = vadd.f32 %v1771_v36, %v440_v21 }
 0x151   :  { %v968_v22 = vpop.f32.mrf.mxu3 }
 0x152   :  { %1467 = vmatmul.msk.bf16.gmra.mxu0 %vm270_vm1, %v1579_v19  ;;  %v969_v24 = vadd.f32 %v968_v22, %v1889_v7  ;;  %v564_v31 = vmul.f32 0.1, %v441_v26 }
 0x153   :  { %v1020_v25 = vpop.f32.mrf.mxu2 }
 0x154   :  { %v1021_v27 = vadd.f32 %v1020_v25, %v1897_v15  ;;  %1271 = vst [vmem:[#allocation2 + $0x350] sm:$0xff] %v969_v24  ;;  %v628_v37 = vmax.f32 %v441_v26, %v564_v31 }
 0x155   :  { %v853_v28 = vpop.f32.mrf.mxu1 }
 0x156   :  { %1178 = vst [vmem:[#allocation2 + $0x68] sm:$0xff] %v1021_v27  ;;  %v854_v29 = vadd.f32 %v853_v28, %v1889_v7  ;;  %1555 = vmatmul.msk.bf16.gmra.mxu3 %vm730_vm2, %v1839_v0 }
 0x157   :  { %v442_v30 = vpop.f32.mrf.mxu0 }
 0x158   :  { %1179 = vst [vmem:[#allocation2 + $0x70] sm:$0xff] %v854_v29  ;;  %v443_v32 = vadd.f32 %v1771_v36, %v442_v30  ;;  %v1582_v29 = vld [vmem:[%s2139_s0 + $0xb8] sm:$0xff] }
 0x159   :  { %v971_v33 = vpop.f32.mrf.mxu3 }
 0x15a   :  { %v565_v4 = vmul.f32 0.1, %v443_v32  ;;  %v972_v34 = vadd.f32 %v971_v33, %v1889_v7 }
 0x15b   :  { %v1022_v35 = vpop.f32.mrf.mxu2 }
 0x15c   :  { %v629_v39 = vmax.f32 %v443_v32, %v565_v4  ;;  %v1023_v40 = vadd.f32 %v1022_v35, %v1897_v15  ;;  %1273 = vst [vmem:[#allocation2 + $0x360] sm:$0xff] %v972_v34 }
 0x15d   :  { %v856_v41 = vpop.f32.mrf.mxu1 }
 0x15e   :  { %v680_v43 = vpack.c.bf16 %v629_v39, %v628_v37  ;;  %1180 = vst [vmem:[#allocation2 + $0x78] sm:$0xff] %v1023_v40  ;;  %v857_v0 = vadd.f32 %v856_v41, %v1889_v7 }
 0x15f   :  { %v445_v47 = vpop.f32.mrf.mxu0 }
 0x160   :  { %1181 = vst [vmem:[#allocation2 + $0x80] sm:$0xff] %v857_v0  ;;  %1507 = vmatmul.msk.bf16.gmra.mxu1 %vm730_vm2, %v680_v43  ;;  %1539 = vmatmul.msk.bf16.gmra.mxu2 %vm730_vm2, %v680_v43  ;;  %v446_v51 = vadd.f32 %v1771_v36, %v445_v47 }
 0x161   :  { %v973_v48 = vpop.f32.mrf.mxu3 }
 0x162   :  { %1468 = vmatmul.msk.bf16.gmra.mxu0 %vm270_vm1, %v1580_v46  ;;  %v974_v49 = vadd.f32 %v973_v48, %v1889_v7  ;;  %v566_v56 = vmul.f32 0.1, %v446_v51 }
 0x163   :  { %v1025_v50 = vpop.f32.mrf.mxu2 }
 0x164   :  { %v1026_v52 = vadd.f32 %v1025_v50, %v1897_v15  ;;  %1275 = vst [vmem:[#allocation2 + $0x370] sm:$0xff] %v974_v49  ;;  %v630_v61 = vmax.f32 %v446_v51, %v566_v56 }
 0x165   :  { %v858_v53 = vpop.f32.mrf.mxu1 }
 0x166   :  { %1182 = vst [vmem:[#allocation2 + $0x88] sm:$0xff] %v1026_v52  ;;  %v859_v54 = vadd.f32 %v858_v53, %v1889_v7  ;;  %1556 = vmatmul.msk.bf16.gmra.mxu3 %vm730_vm2, %v1853_v20 }
 0x167   :  { %v447_v55 = vpop.f32.mrf.mxu0 }
 0x168   :  { %1183 = vst [vmem:[#allocation2 + $0x90] sm:$0xff] %v859_v54  ;;  %v448_v23 = vadd.f32 %v1771_v36, %v447_v55 }
 0x169   :  { %v976_v57 = vpop.f32.mrf.mxu3 }
 0x16a   :  { %v567_v58 = vmul.f32 0.1, %v448_v23  ;;  %v977_v59 = vadd.f32 %v976_v57, %v1889_v7 }
 0x16b   :  { %v1027_v60 = vpop.f32.mrf.mxu2 }
 0x16c   :  { %v631_v62 = vmax.f32 %v448_v23, %v567_v58  ;;  %v1028_v1 = vadd.f32 %v1027_v60, %v1897_v15  ;;  %1277 = vst [vmem:[#allocation2 + $0x380] sm:$0xff] %v977_v59 }
 0x16d   :  { %v861_v2 = vpop.f32.mrf.mxu1 }
 0x16e   :  { %v681_v3 = vpack.c.bf16 %v631_v62, %v630_v61  ;;  %1184 = vst [vmem:[#allocation2 + $0x98] sm:$0xff] %v1028_v1  ;;  %v862_v20 = vadd.f32 %v861_v2, %v1889_v7 }
 0x16f   :  { %v450_v6 = vpop.f32.mrf.mxu0 }
 0x170   :  { %1185 = vst [vmem:[#allocation2 + $0xa0] sm:$0xff] %v862_v20  ;;  %1508 = vmatmul.msk.bf16.gmra.mxu1 %vm730_vm2, %v681_v3  ;;  %1540 = vmatmul.msk.bf16.gmra.mxu2 %vm730_vm2, %v681_v3  ;;  %v451_v11 = vadd.f32 %v1771_v36, %v450_v6 }
 0x171   :  { %v978_v8 = vpop.f32.mrf.mxu3 }
 0x172   :  { %1469 = vmatmul.msk.bf16.gmra.mxu0 %vm270_vm1, %v1581_v5  ;;  %v979_v9 = vadd.f32 %v978_v8, %v1889_v7  ;;  %v568_v17 = vmul.f32 0.1, %v451_v11 }
 0x173   :  { %v1030_v10 = vpop.f32.mrf.mxu2 }
 0x174   :  { %v1031_v12 = vadd.f32 %v1030_v10, %v1897_v15  ;;  %1279 = vst [vmem:[#allocation2 + $0x390] sm:$0xff] %v979_v9  ;;  %v632_v24 = vmax.f32 %v451_v11, %v568_v17 }
 0x175   :  { %v863_v13 = vpop.f32.mrf.mxu1 }
 0x176   :  { %1186 = vst [vmem:[#allocation2 + $0xa8] sm:$0xff] %v1031_v12  ;;  %v864_v14 = vadd.f32 %v863_v13, %v1889_v7  ;;  %1557 = vmatmul.msk.bf16.gmra.mxu3 %vm730_vm2, %v1867_v42 }
 0x177   :  { %v452_v16 = vpop.f32.mrf.mxu0 }
 0x178   :  { %1187 = vst [vmem:[#allocation2 + $0xb0] sm:$0xff] %v864_v14  ;;  %v453_v18 = vadd.f32 %v1771_v36, %v452_v16 }
 0x179   :  { %v981_v44 = vpop.f32.mrf.mxu3 }
 0x17a   :  { %v569_v19 = vmul.f32 0.1, %v453_v18  ;;  %v982_v21 = vadd.f32 %v981_v44, %v1889_v7 }
 0x17b   :  { %v1032_v22 = vpop.f32.mrf.mxu2 }
 0x17c   :  { %v633_v25 = vmax.f32 %v453_v18, %v569_v19  ;;  %v1033_v26 = vadd.f32 %v1032_v22, %v1897_v15  ;;  %1281 = vst [vmem:[#allocation2 + $0x3a0] sm:$0xff] %v982_v21 }
 0x17d   :  { %v866_v27 = vpop.f32.mrf.mxu1 }
 0x17e   :  { %v682_v28 = vpack.c.bf16 %v633_v25, %v632_v24  ;;  %1188 = vst [vmem:[#allocation2 + $0xb8] sm:$0xff] %v1033_v26  ;;  %v867_v42 = vadd.f32 %v866_v27, %v1889_v7 }
 0x17f   :  { %v455_v30 = vpop.f32.mrf.mxu0 }
 0x180   :  { %1189 = vst [vmem:[#allocation2 + $0xc0] sm:$0xff] %v867_v42  ;;  %1509 = vmatmul.msk.bf16.gmra.mxu1 %vm730_vm2, %v682_v28  ;;  %1541 = vmatmul.msk.bf16.gmra.mxu2 %vm730_vm2, %v682_v28  ;;  %v456_v4 = vadd.f32 %v1771_v36, %v455_v30 }
 0x181   :  { %v983_v31 = vpop.f32.mrf.mxu3 }
 0x182   :  { %1470 = vmatmul.msk.bf16.gmra.mxu0 %vm270_vm1, %v1582_v29  ;;  %v984_v32 = vadd.f32 %v983_v31, %v1889_v7  ;;  %v570_v40 = vmul.f32 0.1, %v456_v4 }
 0x183   :  { %v1035_v33 = vpop.f32.mrf.mxu2 }
 0x184   :  { %v1036_v34 = vadd.f32 %v1035_v33, %v1897_v15  ;;  %1283 = vst [vmem:[#allocation2 + $0x3b0] sm:$0xff] %v984_v32  ;;  %v634_v48 = vmax.f32 %v456_v4, %v570_v40 }
 0x185   :  { %v868_v35 = vpop.f32.mrf.mxu1 }
 0x186   :  { %1190 = vst [vmem:[#allocation2 + $0xc8] sm:$0xff] %v1036_v34  ;;  %v869_v37 = vadd.f32 %v868_v35, %v1889_v7  ;;  %1558 = vmatmul.msk.bf16.gmra.mxu3 %vm730_vm2, %v1881_v63 }
 0x187   :  { %v457_v39 = vpop.f32.mrf.mxu0 }
 0x188   :  { %1191 = vst [vmem:[#allocation2 + $0xd0] sm:$0xff] %v869_v37  ;;  %v458_v41 = vadd.f32 %v1771_v36, %v457_v39 }
 0x189   :  { %v986_v43 = vpop.f32.mrf.mxu3 }
 0x18a   :  { %v571_v0 = vmul.f32 0.1, %v458_v41  ;;  %v987_v46 = vadd.f32 %v986_v43, %v1889_v7 }
 0x18b   :  { %v1037_v47 = vpop.f32.mrf.mxu2 }
 0x18c   :  { %v635_v49 = vmax.f32 %v458_v41, %v571_v0  ;;  %v1038_v50 = vadd.f32 %v1037_v47, %v1897_v15  ;;  %1285 = vst [vmem:[#allocation2 + $0x3c0] sm:$0xff] %v987_v46 }
 0x18d   :  { %v871_v51 = vpop.f32.mrf.mxu1 }
 0x18e   :  { %v683_v52 = vpack.c.bf16 %v635_v49, %v634_v48  ;;  %1192 = vst [vmem:[#allocation2 + $0xd8] sm:$0xff] %v1038_v50  ;;  %v872_v63 = vadd.f32 %v871_v51, %v1889_v7 }
 0x18f   :  { %v460_v53 = vpop.f32.mrf.mxu0 }
 0x190   :  { %1193 = vst [vmem:[#allocation2 + $0xe0] sm:$0xff] %v872_v63  ;;  %1510 = vmatmul.msk.bf16.gmra.mxu1 %vm730_vm2, %v683_v52  ;;  %1542 = vmatmul.msk.bf16.gmra.mxu2 %vm730_vm2, %v683_v52  ;;  %v461_v23 = vadd.f32 %v1771_v36, %v460_v53 }
 0x191   :  { %v988_v54 = vpop.f32.mrf.mxu3 }
 0x192   :  { %v989_v55 = vadd.f32 %v988_v54, %v1889_v7  ;;  %v572_v61 = vmul.f32 0.1, %v461_v23 }
 0x193   :  { %v1040_v56 = vpop.f32.mrf.mxu2 }
 0x194   :  { %v1041_v57 = vadd.f32 %v1040_v56, %v1897_v15  ;;  %1287 = vst [vmem:[#allocation2 + $0x3d0] sm:$0xff] %v989_v55  ;;  %v636_v5 = vmax.f32 %v461_v23, %v572_v61 }
 0x195   :  { %v873_v58 = vpop.f32.mrf.mxu1 }
 0x196   :  { %1194 = vst [vmem:[#allocation2 + $0xe8] sm:$0xff] %v1041_v57  ;;  %v874_v59 = vadd.f32 %v873_v58, %v1889_v7 }
 0x197   :  { %v462_v60 = vpop.f32.mrf.mxu0 }
 0x198   :  { %1195 = vst [vmem:[#allocation2 + $0xf0] sm:$0xff] %v874_v59  ;;  %v463_v62 = vadd.f32 %v1771_v36, %v462_v60 }
 0x199   :  { %v991_v1 = vpop.f32.mrf.mxu3 }
 0x19a   :  { %v573_v2 = vmul.f32 0.1, %v463_v62  ;;  %v992_v3 = vadd.f32 %v991_v1, %v1889_v7 }
 0x19b   :  { %v1042_v20 = vpop.f32.mrf.mxu2 }
 0x19c   :  { %v637_v6 = vmax.f32 %v463_v62, %v573_v2  ;;  %v1043_v8 = vadd.f32 %v1042_v20, %v1897_v15  ;;  %1289 = vst [vmem:[#allocation2 + $0x3e0] sm:$0xff] %v992_v3 }
 0x19d   :  { %v876_v9 = vpop.f32.mrf.mxu1 }
 0x19e   :  { %v684_v10 = vpack.c.bf16 %v637_v6, %v636_v5  ;;  %1196 = vst [vmem:[#allocation2 + $0xf8] sm:$0xff] %v1043_v8  ;;  %v877_v11 = vadd.f32 %v876_v9, %v1889_v7 }
 0x19f   :  { %v465_v12 = vpop.f32.mrf.mxu0 }
 0x1a0   :  { %1197 = vst [vmem:[#allocation2 + $0x100] sm:$0xff] %v877_v11  ;;  %1511 = vmatmul.msk.bf16.gmra.mxu1 %vm730_vm2, %v684_v10  ;;  %1543 = vmatmul.msk.bf16.gmra.mxu2 %vm730_vm2, %v684_v10  ;;  %v466_v17 = vadd.f32 %v1771_v36, %v465_v12 }
 0x1a1   :  { %v993_v13 = vpop.f32.mrf.mxu3 }
 0x1a2   :  { %v994_v14 = vadd.f32 %v993_v13, %v1889_v7  ;;  %v574_v22 = vmul.f32 0.1, %v466_v17 }
 0x1a3   :  { %v1045_v16 = vpop.f32.mrf.mxu2 }
 0x1a4   :  { %v1046_v18 = vadd.f32 %v1045_v16, %v1897_v15  ;;  %1291 = vst [vmem:[#allocation2 + $0x3f0] sm:$0xff] %v994_v14  ;;  %v638_v42 = vmax.f32 %v466_v17, %v574_v22 }
 0x1a5   :  { %v878_v44 = vpop.f32.mrf.mxu1 }
 0x1a6   :  { %1198 = vst [vmem:[#allocation2 + $0x108] sm:$0xff] %v1046_v18  ;;  %v879_v19 = vadd.f32 %v878_v44, %v1889_v7 }
 0x1a7   :  { %v467_v21 = vpop.f32.mrf.mxu0 }
 0x1a8   :  { %1199 = vst [vmem:[#allocation2 + $0x110] sm:$0xff] %v879_v19  ;;  %v468_v24 = vadd.f32 %v1771_v36, %v467_v21  ;;  %v2049_v19 = vld [vmem:[%s2141_s2] ss:$0 sm:$0xff]  ;;  %s1635_s2 = smov [#allocation2]  }
 0x1a9   :  { %v1130_v25 = vpop.f32.mrf.mxu3  ;;  %s1297_s28 = sshll.u32 %s1635_s2, 4  ;;  %s1298_s28 = int_to_ptr.vmem [resolvable:$true] %s1297_s28 }
 0x1aa   :  { %v575_v26 = vmul.f32 0.1, %v468_v24  ;;  %v1131_v27 = vadd.f32 %v1130_v25, %v1897_v15 }
 0x1ab   :  { %v1047_v28 = vpop.f32.mrf.mxu2 }
 0x1ac   :  { %v639_v29 = vmax.f32 %v468_v24, %v575_v26  ;;  %v1048_v30 = vadd.f32 %v1047_v28, %v1897_v15  ;;  %1266 = vst [vmem:[#allocation2 + $0x328] sm:$0xff] %v1131_v27 }
 0x1ad   :  { %v881_v31 = vpop.f32.mrf.mxu1 }
 0x1ae   :  { %v685_v32 = vpack.c.bf16 %v639_v29, %v638_v42  ;;  %1200 = vst [vmem:[#allocation2 + $0x118] sm:$0xff] %v1048_v30  ;;  %v882_v33 = vadd.f32 %v881_v31, %v1889_v7 }
 0x1af   :  { %v470_v4 = vpop.f32.mrf.mxu0 }
 0x1b0   :  { %1201 = vst [vmem:[#allocation2 + $0x120] sm:$0xff] %v882_v33  ;;  %1512 = vmatmul.msk.bf16.gmra.mxu1 %vm730_vm2, %v685_v32  ;;  %1544 = vmatmul.msk.bf16.gmra.mxu2 %vm730_vm2, %v685_v32  ;;  %v471_v39 = vadd.f32 %v1771_v36, %v470_v4 }
 0x1b1   :  { %v1132_v34 = vpop.f32.mrf.mxu3 }
 0x1b2   :  { %v1133_v35 = vadd.f32 %v1132_v34, %v1897_v15  ;;  %v576_v46 = vmul.f32 0.1, %v471_v39 }
 0x1b3   :  { %v1050_v37 = vpop.f32.mrf.mxu2 }
 0x1b4   :  { %v1051_v40 = vadd.f32 %v1050_v37, %v1897_v15  ;;  %1268 = vst [vmem:[#allocation2 + $0x338] sm:$0xff] %v1133_v35  ;;  %v640_v52 = vmax.f32 %v471_v39, %v576_v46 }
 0x1b5   :  { %v883_v41 = vpop.f32.mrf.mxu1 }
 0x1b6   :  { %1202 = vst [vmem:[#allocation2 + $0x128] sm:$0xff] %v1051_v40  ;;  %v884_v43 = vadd.f32 %v883_v41, %v1889_v7 }
 0x1b7   :  { %v472_v0 = vpop.f32.mrf.mxu0 }
 0x1b8   :  { %1203 = vst [vmem:[#allocation2 + $0x130] sm:$0xff] %v884_v43  ;;  %v473_v47 = vadd.f32 %v1771_v36, %v472_v0 }
 0x1b9   :  { %v1135_v48 = vpop.f32.mrf.mxu3 }
 0x1ba   :  { %v577_v49 = vmul.f32 0.1, %v473_v47  ;;  %v1136_v50 = vadd.f32 %v1135_v48, %v1897_v15 }
 0x1bb   :  { %v1052_v51 = vpop.f32.mrf.mxu2 }
 0x1bc   :  { %v641_v63 = vmax.f32 %v473_v47, %v577_v49  ;;  %v1053_v53 = vadd.f32 %v1052_v51, %v1897_v15  ;;  %1270 = vst [vmem:[#allocation2 + $0x348] sm:$0xff] %v1136_v50 }
 0x1bd   :  { %v886_v54 = vpop.f32.mrf.mxu1 }
 0x1be   :  { %v686_v55 = vpack.c.bf16 %v641_v63, %v640_v52  ;;  %1204 = vst [vmem:[#allocation2 + $0x138] sm:$0xff] %v1053_v53  ;;  %v887_v56 = vadd.f32 %v886_v54, %v1889_v7 }
 0x1bf   :  { %v475_v23 = vpop.f32.mrf.mxu0 }
 0x1c0   :  { %1205 = vst [vmem:[#allocation2 + $0x140] sm:$0xff] %v887_v56  ;;  %1513 = vmatmul.msk.bf16.gmra.mxu1 %vm730_vm2, %v686_v55  ;;  %1545 = vmatmul.msk.bf16.gmra.mxu2 %vm730_vm2, %v686_v55  ;;  %v476_v60 = vadd.f32 %v1771_v36, %v475_v23 }
 0x1c1   :  { %v1137_v57 = vpop.f32.mrf.mxu3 }
 0x1c2   :  { %v1138_v58 = vadd.f32 %v1137_v57, %v1897_v15  ;;  %v578_v3 = vmul.f32 0.1, %v476_v60 }
 0x1c3   :  { %v1055_v59 = vpop.f32.mrf.mxu2 }
 0x1c4   :  { %v1056_v61 = vadd.f32 %v1055_v59, %v1897_v15  ;;  %1272 = vst [vmem:[#allocation2 + $0x358] sm:$0xff] %v1138_v58  ;;  %v642_v10 = vmax.f32 %v476_v60, %v578_v3 }
 0x1c5   :  { %v888_v62 = vpop.f32.mrf.mxu1 }
 0x1c6   :  { %1206 = vst [vmem:[#allocation2 + $0x148] sm:$0xff] %v1056_v61  ;;  %v889_v1 = vadd.f32 %v888_v62, %v1889_v7 }
 0x1c7   :  { %v477_v2 = vpop.f32.mrf.mxu0 }
 0x1c8   :  { %1207 = vst [vmem:[#allocation2 + $0x150] sm:$0xff] %v889_v1  ;;  %v478_v20 = vadd.f32 %v1771_v36, %v477_v2 }
 0x1c9   :  { %v1140_v5 = vpop.f32.mrf.mxu3 }
 0x1ca   :  { %v579_v6 = vmul.f32 0.1, %v478_v20  ;;  %v1141_v8 = vadd.f32 %v1140_v5, %v1897_v15 }
 0x1cb   :  { %v1057_v9 = vpop.f32.mrf.mxu2 }
 0x1cc   :  { %v643_v11 = vmax.f32 %v478_v20, %v579_v6  ;;  %v1058_v12 = vadd.f32 %v1057_v9, %v1897_v15  ;;  %1274 = vst [vmem:[#allocation2 + $0x368] sm:$0xff] %v1141_v8 }
 0x1cd   :  { %v891_v13 = vpop.f32.mrf.mxu1 }
 0x1ce   :  { %v687_v14 = vpack.c.bf16 %v643_v11, %v642_v10  ;;  %1208 = vst [vmem:[#allocation2 + $0x158] sm:$0xff] %v1058_v12  ;;  %v892_v16 = vadd.f32 %v891_v13, %v1889_v7 }
 0x1cf   :  { %v480_v17 = vpop.f32.mrf.mxu0 }
 0x1d0   :  { %1209 = vst [vmem:[#allocation2 + $0x160] sm:$0xff] %v892_v16  ;;  %1514 = vmatmul.msk.bf16.gmra.mxu1 %vm730_vm2, %v687_v14  ;;  %1546 = vmatmul.msk.bf16.gmra.mxu2 %vm730_vm2, %v687_v14  ;;  %v481_v21 = vadd.f32 %v2049_v19, %v480_v17 }
 0x1d1   :  { %v1142_v36 = vpop.f32.mrf.mxu3 }
 0x1d2   :  { %v1143_v18 = vadd.f32 %v1142_v36, %v1897_v15  ;;  %v580_v27 = vmul.f32 0.1, %v481_v21 }
 0x1d3   :  { %v1060_v44 = vpop.f32.mrf.mxu2 }
 0x1d4   :  { %v1061_v22 = vadd.f32 %v1060_v44, %v1897_v15  ;;  %1276 = vst [vmem:[#allocation2 + $0x378] sm:$0xff] %v1143_v18  ;;  %v644_v32 = vmax.f32 %v481_v21, %v580_v27 }
 0x1d5   :  { %v893_v24 = vpop.f32.mrf.mxu1 }
 0x1d6   :  { %1210 = vst [vmem:[#allocation2 + $0x168] sm:$0xff] %v1061_v22  ;;  %v894_v25 = vadd.f32 %v893_v24, %v1889_v7 }
 0x1d7   :  { %v482_v26 = vpop.f32.mrf.mxu0 }
 0x1d8   :  { %1211 = vst [vmem:[#allocation2 + $0x170] sm:$0xff] %v894_v25  ;;  %v483_v28 = vadd.f32 %v2049_v19, %v482_v26 }
 0x1d9   :  { %v1145_v42 = vpop.f32.mrf.mxu3 }
 0x1da   :  { %v581_v29 = vmul.f32 0.1, %v483_v28  ;;  %v1146_v30 = vadd.f32 %v1145_v42, %v1897_v15 }
 0x1db   :  { %v1062_v31 = vpop.f32.mrf.mxu2 }
 0x1dc   :  { %v645_v33 = vmax.f32 %v483_v28, %v581_v29  ;;  %v1063_v4 = vadd.f32 %v1062_v31, %v1897_v15  ;;  %1278 = vst [vmem:[#allocation2 + $0x388] sm:$0xff] %v1146_v30 }
 0x1dd   :  { %v896_v34 = vpop.f32.mrf.mxu1 }
 0x1de   :  { %v688_v35 = vpack.c.bf16 %v645_v33, %v644_v32  ;;  %1212 = vst [vmem:[#allocation2 + $0x178] sm:$0xff] %v1063_v4  ;;  %v897_v37 = vadd.f32 %v896_v34, %v1889_v7 }
 0x1df   :  { %v485_v39 = vpop.f32.mrf.mxu0 }
 0x1e0   :  { %1213 = vst [vmem:[#allocation2 + $0x180] sm:$0xff] %v897_v37  ;;  %1515 = vmatmul.msk.bf16.gmra.mxu1 %vm730_vm2, %v688_v35  ;;  %1547 = vmatmul.msk.bf16.gmra.mxu2 %vm730_vm2, %v688_v35  ;;  %v486_v0 = vadd.f32 %v2049_v19, %v485_v39 }
 0x1e1   :  { %v1147_v40 = vpop.f32.mrf.mxu3 }
 0x1e2   :  { %v1148_v41 = vadd.f32 %v1147_v40, %v1897_v15  ;;  %v582_v50 = vmul.f32 0.1, %v486_v0 }
 0x1e3   :  { %v1065_v43 = vpop.f32.mrf.mxu2 }
 0x1e4   :  { %v1066_v46 = vadd.f32 %v1065_v43, %v1897_v15  ;;  %1280 = vst [vmem:[#allocation2 + $0x398] sm:$0xff] %v1148_v41  ;;  %v646_v55 = vmax.f32 %v486_v0, %v582_v50 }
 0x1e5   :  { %v898_v47 = vpop.f32.mrf.mxu1 }
 0x1e6   :  { %1214 = vst [vmem:[#allocation2 + $0x188] sm:$0xff] %v1066_v46  ;;  %v899_v48 = vadd.f32 %v898_v47, %v1889_v7  ;;  %v501_v46 = vadd.f32 %v2049_v19, %v1775_v38  ;;  %v503_v47 = vadd.f32 %v2049_v19, %v1778_v45 }
 0x1e7   :  { %v487_v49 = vpop.f32.mrf.mxu0 }
 0x1e8   :  { %1215 = vst [vmem:[#allocation2 + $0x190] sm:$0xff] %v899_v48  ;;  %v488_v51 = vadd.f32 %v2049_v19, %v487_v49 }
 0x1e9   :  { %v1150_v52 = vpop.f32.mrf.mxu3 }
 0x1ea   :  { %v583_v63 = vmul.f32 0.1, %v488_v51  ;;  %v1151_v53 = vadd.f32 %v1150_v52, %v1897_v15  ;;  %v588_v52 = vmul.f32 0.1, %v501_v46 }
 0x1eb   :  { %v1067_v54 = vpop.f32.mrf.mxu2 }
 0x1ec   :  { %v647_v56 = vmax.f32 %v488_v51, %v583_v63  ;;  %v1068_v23 = vadd.f32 %v1067_v54, %v1897_v15  ;;  %1282 = vst [vmem:[#allocation2 + $0x3a8] sm:$0xff] %v1151_v53  ;;  %v589_v63 = vmul.f32 0.1, %v503_v47  ;;  %v652_v54 = vmax.f32 %v501_v46, %v588_v52 }
 0x1ed   :  { %v901_v57 = vpop.f32.mrf.mxu1 }
 0x1ee   :  { %v689_v58 = vpack.c.bf16 %v647_v56, %v646_v55  ;;  %1216 = vst [vmem:[#allocation2 + $0x198] sm:$0xff] %v1068_v23  ;;  %v902_v59 = vadd.f32 %v901_v57, %v1889_v7  ;;  %v653_v55 = vmax.f32 %v503_v47, %v589_v63 }
 0x1ef   :  { %v490_v60 = vpop.f32.mrf.mxu0 }
 0x1f0   :  { %1217 = vst [vmem:[#allocation2 + $0x1a0] sm:$0xff] %v902_v59  ;;  %1516 = vmatmul.msk.bf16.gmra.mxu1 %vm730_vm2, %v689_v58  ;;  %1548 = vmatmul.msk.bf16.gmra.mxu2 %vm730_vm2, %v689_v58  ;;  %v491_v2 = vadd.f32 %v2049_v19, %v490_v60  ;;  %v692_v45 = vpack.c.bf16 %v653_v55, %v652_v54 }
 0x1f1   :  { %v1152_v61 = vpop.f32.mrf.mxu3 }
 0x1f2   :  { %v1153_v62 = vadd.f32 %v1152_v61, %v1897_v15  ;;  %v584_v8 = vmul.f32 0.1, %v491_v2 }
 0x1f3   :  { %v1070_v1 = vpop.f32.mrf.mxu2 }
 0x1f4   :  { %v1071_v3 = vadd.f32 %v1070_v1, %v1897_v15  ;;  %1284 = vst [vmem:[#allocation2 + $0x3b8] sm:$0xff] %v1153_v62  ;;  %v648_v14 = vmax.f32 %v491_v2, %v584_v8 }
 0x1f5   :  { %v903_v20 = vpop.f32.mrf.mxu1 }
 0x1f6   :  { %1218 = vst [vmem:[#allocation2 + $0x1a8] sm:$0xff] %v1071_v3  ;;  %v904_v5 = vadd.f32 %v903_v20, %v1889_v7 }
 0x1f7   :  { %v492_v6 = vpop.f32.mrf.mxu0 }
 0x1f8   :  { %1219 = vst [vmem:[#allocation2 + $0x1b0] sm:$0xff] %v904_v5  ;;  %v493_v9 = vadd.f32 %v2049_v19, %v492_v6 }
 0x1f9   :  { %v1155_v10 = vpop.f32.mrf.mxu3 }
 0x1fa   :  { %v585_v11 = vmul.f32 0.1, %v493_v9  ;;  %v1156_v12 = vadd.f32 %v1155_v10, %v1897_v15 }
 0x1fb   :  { %v1072_v13 = vpop.f32.mrf.mxu2 }
 0x1fc   :  { %v649_v16 = vmax.f32 %v493_v9, %v585_v11  ;;  %v1073_v17 = vadd.f32 %v1072_v13, %v1897_v15  ;;  %1286 = vst [vmem:[#allocation2 + $0x3c8] sm:$0xff] %v1156_v12 }
 0x1fd   :  { %v906_v36 = vpop.f32.mrf.mxu1 }
 0x1fe   :  { %v690_v18 = vpack.c.bf16 %v649_v16, %v648_v14  ;;  %1220 = vst [vmem:[#allocation2 + $0x1b8] sm:$0xff] %v1073_v17  ;;  %v907_v44 = vadd.f32 %v906_v36, %v1889_v7 }
 0x1ff   :  { %v495_v21 = vpop.f32.mrf.mxu0 }
 0x200   :  { %1221 = vst [vmem:[#allocation2 + $0x1c0] sm:$0xff] %v907_v44  ;;  %1517 = vmatmul.msk.bf16.gmra.mxu1 %vm730_vm2, %v690_v18  ;;  %1549 = vmatmul.msk.bf16.gmra.mxu2 %vm730_vm2, %v690_v18  ;;  %v496_v26 = vadd.f32 %v2049_v19, %v495_v21 }
 0x201   :  { %v1157_v22 = vpop.f32.mrf.mxu3 }
 0x202   :  { %v1158_v24 = vadd.f32 %v1157_v22, %v1897_v15  ;;  %v586_v30 = vmul.f32 0.1, %v496_v26 }
 0x203   :  { %v1075_v25 = vpop.f32.mrf.mxu2 }
 0x204   :  { %v1076_v27 = vadd.f32 %v1075_v25, %v1897_v15  ;;  %1288 = vst [vmem:[#allocation2 + $0x3d8] sm:$0xff] %v1158_v24  ;;  %v650_v35 = vmax.f32 %v496_v26, %v586_v30 }
 0x205   :  { %v908_v28 = vpop.f32.mrf.mxu1 }
 0x206   :  { %1222 = vst [vmem:[#allocation2 + $0x1c8] sm:$0xff] %v1076_v27  ;;  %v909_v42 = vadd.f32 %v908_v28, %v1889_v7 }
 0x207   :  { %v497_v29 = vpop.f32.mrf.mxu0 }
 0x208   :  { %1223 = vst [vmem:[#allocation2 + $0x1d0] sm:$0xff] %v909_v42  ;;  %v498_v31 = vadd.f32 %v2049_v19, %v497_v29 }
 0x209   :  { %v1160_v32 = vpop.f32.mrf.mxu3 }
 0x20a   :  { %v587_v33 = vmul.f32 0.1, %v498_v31  ;;  %v1161_v4 = vadd.f32 %v1160_v32, %v1897_v15 }
 0x20b   :  { %v1077_v34 = vpop.f32.mrf.mxu2 }
 0x20c   :  { %v651_v37 = vmax.f32 %v498_v31, %v587_v33  ;;  %v1078_v39 = vadd.f32 %v1077_v34, %v1897_v15  ;;  %1290 = vst [vmem:[#allocation2 + $0x3e8] sm:$0xff] %v1161_v4 }
 0x20d   :  { %v911_v40 = vpop.f32.mrf.mxu1 }
 0x20e   :  { %v691_v41 = vpack.c.bf16 %v651_v37, %v650_v35  ;;  %1224 = vst [vmem:[#allocation2 + $0x1d8] sm:$0xff] %v1078_v39  ;;  %v912_v43 = vadd.f32 %v911_v40, %v1889_v7 }
 0x210   :  { %1225 = vst [vmem:[#allocation2 + $0x1e0] sm:$0xff] %v912_v43  ;;  %1518 = vmatmul.msk.bf16.gmra.mxu1 %vm730_vm2, %v691_v41  ;;  %1550 = vmatmul.msk.bf16.gmra.mxu2 %vm730_vm2, %v691_v41 }
 0x211   :  { %v1162_v0 = vpop.f32.mrf.mxu3 }
 0x212   :  { %v1163_v48 = vadd.f32 %v1162_v0, %v1897_v15 }
 0x213   :  { %v1080_v49 = vpop.f32.mrf.mxu2 }
 0x214   :  { %v1081_v50 = vadd.f32 %v1080_v49, %v1897_v15  ;;  %1292 = vst [vmem:[#allocation2 + $0x3f8] sm:$0xff] %v1163_v48 }
 0x215   :  { %v913_v51 = vpop.f32.mrf.mxu1 }
 0x216   :  { %1226 = vst [vmem:[#allocation2 + $0x1e8] sm:$0xff] %v1081_v50  ;;  %v914_v53 = vadd.f32 %v913_v51, %v1889_v7 }
 0x218   :  { %1227 = vst [vmem:[#allocation2 + $0x1f0] sm:$0xff] %v914_v53 }
 0x21b   :  { %v1082_v56 = vpop.f32.mrf.mxu2 }
 0x21c   :  { %v1083_v38 = vadd.f32 %v1082_v56, %v1897_v15 }
 0x21d   :  { %v916_v23 = vpop.f32.mrf.mxu1 }
 0x21e   :  { %1228 = vst [vmem:[#allocation2 + $0x1f8] sm:$0xff] %v1083_v38  ;;  %v917_v19 = vadd.f32 %v916_v23, %v1889_v7 }
 0x220   :  { %1229 = vst [vmem:[#allocation2 + $0x200] sm:$0xff] %v917_v19  ;;  %1519 = vmatmul.msk.bf16.gmra.mxu1 %vm730_vm2, %v692_v45  ;;  %1551 = vmatmul.msk.bf16.gmra.mxu2 %vm730_vm2, %v692_v45 }
 0x223   :  { %v1085_v57 = vpop.f32.mrf.mxu2 }
 0x224   :  { %v1086_v58 = vadd.f32 %v1085_v57, %v1897_v15 }
 0x225   :  { %v918_v59 = vpop.f32.mrf.mxu1 }
 0x226   :  { %1230 = vst [vmem:[#allocation2 + $0x208] sm:$0xff] %v1086_v58  ;;  %v919_v60 = vadd.f32 %v918_v59, %v1889_v7 }
 0x228   :  { %1231 = vst [vmem:[#allocation2 + $0x210] sm:$0xff] %v919_v60 }
 0x22b   :  { %v1087_v61 = vpop.f32.mrf.mxu2 }
 0x22c   :  { %v1088_v62 = vadd.f32 %v1087_v61, %v1897_v15 }
 0x22d   :  { %v921_v1 = vpop.f32.mrf.mxu1 }
 0x22e   :  { %1232 = vst [vmem:[#allocation2 + $0x218] sm:$0xff] %v1088_v62  ;;  %v922_v2 = vadd.f32 %v921_v1, %v1889_v7 }
 0x230   :  { %1233 = vst [vmem:[#allocation2 + $0x220] sm:$0xff] %v922_v2 }
 0x233   :  { %v1090_v3 = vpop.f32.mrf.mxu2 }
 0x234   :  { %v1091_v20 = vadd.f32 %v1090_v3, %v1897_v15 }
 0x235   :  { %v923_v5 = vpop.f32.mrf.mxu1 }
 0x236   :  { %1234 = vst [vmem:[#allocation2 + $0x228] sm:$0xff] %v1091_v20  ;;  %v924_v6 = vadd.f32 %v923_v5, %v1889_v7 }
 0x238   :  { %1235 = vst [vmem:[#allocation2 + $0x230] sm:$0xff] %v924_v6 }
 0x23b   :  { %v1092_v8 = vpop.f32.mrf.mxu2 }
 0x23c   :  { %v1093_v9 = vadd.f32 %v1092_v8, %v1897_v15 }
 0x23d   :  { %v926_v10 = vpop.f32.mrf.mxu1 }
 0x23e   :  { %1236 = vst [vmem:[#allocation2 + $0x238] sm:$0xff] %v1093_v9  ;;  %v927_v11 = vadd.f32 %v926_v10, %v1889_v7 }
 0x240   :  { %1237 = vst [vmem:[#allocation2 + $0x240] sm:$0xff] %v927_v11 }
 0x243   :  { %v1095_v12 = vpop.f32.mrf.mxu2 }
 0x244   :  { %v1096_v13 = vadd.f32 %v1095_v12, %v1897_v15 }
 0x245   :  { %v928_v14 = vpop.f32.mrf.mxu1 }
 0x246   :  { %1238 = vst [vmem:[#allocation2 + $0x248] sm:$0xff] %v1096_v13  ;;  %v929_v16 = vadd.f32 %v928_v14, %v1889_v7 }
 0x248   :  { %1239 = vst [vmem:[#allocation2 + $0x250] sm:$0xff] %v929_v16 }
 0x24b   :  { %v1097_v17 = vpop.f32.mrf.mxu2 }
 0x24c   :  { %v1098_v36 = vadd.f32 %v1097_v17, %v1897_v15 }
 0x24d   :  { %v931_v18 = vpop.f32.mrf.mxu1 }
 0x24e   :  { %1240 = vst [vmem:[#allocation2 + $0x258] sm:$0xff] %v1098_v36  ;;  %v932_v44 = vadd.f32 %v931_v18, %v1889_v7 }
 0x250   :  { %1241 = vst [vmem:[#allocation2 + $0x260] sm:$0xff] %v932_v44 }
 0x253   :  { %v1100_v21 = vpop.f32.mrf.mxu2 }
 0x254   :  { %v1101_v22 = vadd.f32 %v1100_v21, %v1897_v15 }
 0x255   :  { %v933_v24 = vpop.f32.mrf.mxu1 }
 0x256   :  { %1242 = vst [vmem:[#allocation2 + $0x268] sm:$0xff] %v1101_v22  ;;  %v934_v25 = vadd.f32 %v933_v24, %v1889_v7 }
 0x258   :  { %1243 = vst [vmem:[#allocation2 + $0x270] sm:$0xff] %v934_v25 }
 0x25b   :  { %v1102_v26 = vpop.f32.mrf.mxu2 }
 0x25c   :  { %v1103_v27 = vadd.f32 %v1102_v26, %v1897_v15 }
 0x25d   :  { %v936_v28 = vpop.f32.mrf.mxu1 }
 0x25e   :  { %1244 = vst [vmem:[#allocation2 + $0x278] sm:$0xff] %v1103_v27  ;;  %v937_v42 = vadd.f32 %v936_v28, %v1889_v7 }
 0x260   :  { %1245 = vst [vmem:[#allocation2 + $0x280] sm:$0xff] %v937_v42 }
 0x263   :  { %v1105_v29 = vpop.f32.mrf.mxu2 }
 0x264   :  { %v1106_v30 = vadd.f32 %v1105_v29, %v1897_v15 }
 0x265   :  { %v938_v31 = vpop.f32.mrf.mxu1 }
 0x266   :  { %1246 = vst [vmem:[#allocation2 + $0x288] sm:$0xff] %v1106_v30  ;;  %v939_v32 = vadd.f32 %v938_v31, %v1889_v7 }
 0x268   :  { %1247 = vst [vmem:[#allocation2 + $0x290] sm:$0xff] %v939_v32 }
 0x26b   :  { %v1107_v33 = vpop.f32.mrf.mxu2 }
 0x26c   :  { %v1108_v4 = vadd.f32 %v1107_v33, %v1897_v15 }
 0x26d   :  { %v941_v34 = vpop.f32.mrf.mxu1 }
 0x26e   :  { %1248 = vst [vmem:[#allocation2 + $0x298] sm:$0xff] %v1108_v4  ;;  %v942_v35 = vadd.f32 %v941_v34, %v1889_v7 }
 0x270   :  { %1249 = vst [vmem:[#allocation2 + $0x2a0] sm:$0xff] %v942_v35 }
 0x273   :  { %v1110_v37 = vpop.f32.mrf.mxu2 }
 0x274   :  { %v1111_v39 = vadd.f32 %v1110_v37, %v1897_v15 }
 0x275   :  { %v943_v40 = vpop.f32.mrf.mxu1 }
 0x276   :  { %1250 = vst [vmem:[#allocation2 + $0x2a8] sm:$0xff] %v1111_v39  ;;  %v944_v41 = vadd.f32 %v943_v40, %v1889_v7 }
 0x278   :  { %1251 = vst [vmem:[#allocation2 + $0x2b0] sm:$0xff] %v944_v41 }
 0x27b   :  { %v1112_v43 = vpop.f32.mrf.mxu2 }
 0x27c   :  { %v1113_v0 = vadd.f32 %v1112_v43, %v1897_v15 }
 0x27d   :  { %v946_v46 = vpop.f32.mrf.mxu1 }
 0x27e   :  { %1252 = vst [vmem:[#allocation2 + $0x2b8] sm:$0xff] %v1113_v0  ;;  %v947_v47 = vadd.f32 %v946_v46, %v1889_v7 }
 0x280   :  { %1253 = vst [vmem:[#allocation2 + $0x2c0] sm:$0xff] %v947_v47 }
 0x283   :  { %v1115_v48 = vpop.f32.mrf.mxu2 }
 0x284   :  { %v1116_v49 = vadd.f32 %v1115_v48, %v1897_v15 }
 0x285   :  { %v948_v50 = vpop.f32.mrf.mxu1 }
 0x286   :  { %1254 = vst [vmem:[#allocation2 + $0x2c8] sm:$0xff] %v1116_v49  ;;  %v949_v51 = vadd.f32 %v948_v50, %v1889_v7 }
 0x288   :  { %1255 = vst [vmem:[#allocation2 + $0x2d0] sm:$0xff] %v949_v51 }
 0x28b   :  { %v1117_v52 = vpop.f32.mrf.mxu2 }
 0x28c   :  { %v1118_v63 = vadd.f32 %v1117_v52, %v1897_v15 }
 0x28d   :  { %v951_v53 = vpop.f32.mrf.mxu1 }
 0x28e   :  { %1256 = vst [vmem:[#allocation2 + $0x2d8] sm:$0xff] %v1118_v63  ;;  %v952_v54 = vadd.f32 %v951_v53, %v1889_v7 }
 0x290   :  { %1257 = vst [vmem:[#allocation2 + $0x2e0] sm:$0xff] %v952_v54 }
 0x293   :  { %v1120_v55 = vpop.f32.mrf.mxu2 }
 0x294   :  { %v1121_v56 = vadd.f32 %v1120_v55, %v1897_v15 }
 0x295   :  { %v953_v38 = vpop.f32.mrf.mxu1 }
 0x296   :  { %1258 = vst [vmem:[#allocation2 + $0x2e8] sm:$0xff] %v1121_v56  ;;  %v954_v23 = vadd.f32 %v953_v38, %v1889_v7 }
 0x298   :  { %1259 = vst [vmem:[#allocation2 + $0x2f0] sm:$0xff] %v954_v23 }
 0x29b   :  { %v1122_v45 = vpop.f32.mrf.mxu2 }
 0x29c   :  { %v1123_v19 = vadd.f32 %v1122_v45, %v1897_v15 }
 0x29d   :  { %v956_v57 = vpop.f32.mrf.mxu1 }
 0x29e   :  { %1260 = vst [vmem:[#allocation2 + $0x2f8] sm:$0xff] %v1123_v19  ;;  %v957_v58 = vadd.f32 %v956_v57, %v1889_v7 }
 0x2a0   :  { %1261 = vst [vmem:[#allocation2 + $0x300] sm:$0xff] %v957_v58 }
 0x2a3   :  { %v1125_v59 = vpop.f32.mrf.mxu2 }
 0x2a4   :  { %v1126_v60 = vadd.f32 %v1125_v59, %v1897_v15 }
 0x2a5   :  { %v958_v61 = vpop.f32.mrf.mxu1 }
 0x2a6   :  { %1262 = vst [vmem:[#allocation2 + $0x308] sm:$0xff] %v1126_v60  ;;  %v959_v62 = vadd.f32 %v958_v61, %v1889_v7 }
 0x2a8   :  { %1263 = vst [vmem:[#allocation2 + $0x310] sm:$0xff] %v959_v62 }
 0x2ab   :  { %v1127_v1 = vpop.f32.mrf.mxu2 }
 0x2ac   :  { %v1128_v2 = vadd.f32 %v1127_v1, %v1897_v15 }
 0x2ae   :  { %1264 = vst [vmem:[#allocation2 + $0x318] sm:$0xff] %v1128_v2 }
 0x2af   :  { %1305 = dma.vmem_to_hbm [thread:$0]  %s1298_s28, 16384, %s1300_s30, [#allocation3], %s1636_s6, %s1636_s6, %s1637_s7  }
 0x2b0   :  { %1633 = dma.done.wait [#allocation3], 16384  }
 0x2b1   :  { %1634 = vsyncadd [#allocation3], 4294950912 }
 0x2b2   :  { %1310 = vsyncpa [#allocation3], 1 }

// kernel: _forward.1
= control target key start
LH: loop header
LB: loop body
LE: loop exit
PB: predicated region body
PF: predicated region fallthrough
CT: control target
= control target key end

     0   :  { %vm367_vm0 = vcmask 1041408   ;;  %s2139_s0 = inlined_call_operand.vmem [shape: bf16[512,36], index: 0, kind: input, shape index: {}]   ;;  %s2140_s1 = inlined_call_operand.vmem [shape: bf16[36,32], index: 1, kind: input, shape index: {}]   ;;  %s2141_s2 = inlined_call_operand.vmem [shape: f32[1,32], index: 2, kind: input, shape index: {}]   ;;  %s2142_s3 = inlined_call_operand.vmem [shape: bf16[32,256], index: 3, kind: input, shape index: {}]   ;;  %s2143_s4 = inlined_call_operand.vmem [shape: f32[1,256], index: 4, kind: input, shape index: {}]   ;;  %s2144_s5 = inlined_call_operand.hbm [shape: f32[512,256], index: 5, kind: output, shape index: {}]  }
   0x1   :  { %v90_v0 = vld [vmem:[%s2140_s1 + $0x10] sm:$0x3] }
   0x2   :  { %v264_v1 = vunpack.c.l.b16 %v90_v0 }
   0x3   :  { %10 = vsyncpa [#allocation3], 0  ;;  %v1592_v4 = vld [vmem:[%s2140_s1 + $0x8] sm:$0xff]  ;;  %v1591_v5 = vld [vmem:[%s2140_s1] sm:$0xff]  ;;  %vm270_vm1 = vcmask 293888   ;;  %vm730_vm2 = vcmask 261120  }
   0x4   :  { %v267_v2 = vpack.c.b16 %v264_v1, %v264_v1  ;;  %v1559_v6 = vld [vmem:[%s2139_s0] sm:$0xff]  ;;  %v1560_v8 = vld [vmem:[%s2139_s0 + $0x8] sm:$0xff]  ;;  %v1561_v10 = vld [vmem:[%s2139_s0 + $0x10] sm:$0xff]  ;;  %s1299_s30 = sshll.u32 %s2144_s5, 4  ;;  %s1636_s6 = smov 256   ;;  %s1300_s30 = int_to_ptr.hbm [resolvable:$true] %s1299_s30 }
   0x5   :  { %v1583_v7 = vld [vmem:[%s2139_s0 + $0xc0] sm:$0xff]  ;;  %v1584_v9 = vld [vmem:[%s2139_s0 + $0xc8] sm:$0xff]  ;;  %v1585_v11 = vld [vmem:[%s2139_s0 + $0xd0] sm:$0xff]  ;;  %s1637_s7 = smov 16  }
   0x6   :  { %v369_v3 = vsel %vm367_vm0, %v267_v2, 0  ;;  %v1562_v12 = vld [vmem:[%s2139_s0 + $0x18] sm:$0xff]  ;;  %v1563_v14 = vld [vmem:[%s2139_s0 + $0x20] sm:$0xff]  ;;  %v1564_v16 = vld [vmem:[%s2139_s0 + $0x28] sm:$0xff] }
   0x7   :  { %376 = vmatpush.bf16.msra.mxu0 %v369_v3  ;;  %1597 = vmatpush.bf16.msra.mxu3 %v369_v3  ;;  %v1586_v13 = vld [vmem:[%s2139_s0 + $0xd8] sm:$0xff]  ;;  %v1587_v15 = vld [vmem:[%s2139_s0 + $0xe0] sm:$0xff]  ;;  %v1588_v17 = vld [vmem:[%s2139_s0 + $0xe8] sm:$0xff] }
   0x8   :  { %v1565_v18 = vld [vmem:[%s2139_s0 + $0x30] sm:$0xff]  ;;  %v1596_v21 = vld [vmem:[%s2142_s3 + $0x14] sm:$0xf0]  ;;  %v1491_v24 = vld [vmem:[%s2142_s3 + $0x18] sm:$0xf0] }
   0x9   :  { %v1589_v19 = vld [vmem:[%s2139_s0 + $0xf0] sm:$0xff]  ;;  %v1481_v26 = vld [vmem:[%s2142_s3] sm:$0xf]  ;;  %v1594_v27 = vld [vmem:[%s2142_s3 + $0x4] sm:$0xf0] }
   0xa   :  { %v1489_v20 = vld [vmem:[%s2142_s3 + $0x10] sm:$0xf]  ;;  %v1595_v22 = vld [vmem:[%s2142_s3 + $0x14] sm:$0xf]  ;;  %v1593_v28 = vld [vmem:[%s2142_s3 + $0x4] sm:$0xf]  ;;  %v1482_v29 = vor.u32 %v1594_v27, %v1481_v26 }
   0xb   :  { %377 = vmatpush.bf16.msra.mxu0 %v1592_v4  ;;  %1598 = vmatpush.bf16.msra.mxu3 %v1592_v4  ;;  %v1490_v23 = vor.u32 %v1596_v21, %v1489_v20  ;;  %v1494_v25 = vor.u32 %v1595_v22, %v1491_v24  ;;  %v1483_v30 = vld [vmem:[%s2142_s3 + $0x8] sm:$0xf0]  ;;  %v1566_v32 = vld [vmem:[%s2139_s0 + $0x38] sm:$0xff]  ;;  %v1567_v34 = vld [vmem:[%s2139_s0 + $0x40] sm:$0xff] }
   0xc   :  { %v1486_v31 = vor.u32 %v1593_v28, %v1483_v30  ;;  %v1590_v33 = vld [vmem:[%s2139_s0 + $0xf8] sm:$0xff]  ;;  %v1771_v36 = vld [vmem:[%s2141_s2] ss:$0 sm:$0xff]  ;;  %v1568_v47 = vld [vmem:[%s2139_s0 + $0x48] sm:$0xff] }
   0xd   :  { %833 = vmatpush.bf16.msra.mxu1 %v1490_v23  ;;  %1002 = vmatpush.bf16.msra.mxu2 %v1494_v25  ;;  %v1569_v61 = vld [vmem:[%s2139_s0 + $0x50] sm:$0xff] }
   0xf   :  { %378 = vmatpush.bf16.msra.mxu0 %v1591_v5  ;;  %1599 = vmatpush.bf16.msra.mxu3 %v1591_v5 }
  0x11   :  { %834 = vmatpush.bf16.msra.mxu1 %v1482_v29  ;;  %1003 = vmatpush.bf16.msra.mxu2 %v1486_v31 }
  0x12   :  { %1447 = vmatmul.msk.bf16.vlgmr.msra.gmra.mxu0 %vm270_vm1, %v1559_v6  ;;  %1471 = vmatmul.msk.bf16.vlgmr.msra.gmra.mxu3 %vm270_vm1, %v1583_v7 }
  0x13   :  { %1600 = vmatpush.bf16.msrb.mxu3 %v1490_v23 }
  0x17   :  { %1601 = vmatpush.bf16.msrb.mxu3 %v1482_v29 }
  0x1b   :  { %1602 = vmatpush.bf16.msra.mxu3 %v1494_v25 }
  0x1f   :  { %1603 = vmatpush.bf16.msra.mxu3 %v1486_v31 }
  0x22   :  { %1448 = vmatmul.msk.bf16.gmra.mxu0 %vm270_vm1, %v1560_v8  ;;  %1472 = vmatmul.msk.bf16.gmra.mxu3 %vm270_vm1, %v1584_v9 }
  0x32   :  { %1449 = vmatmul.msk.bf16.gmra.mxu0 %vm270_vm1, %v1561_v10  ;;  %1473 = vmatmul.msk.bf16.gmra.mxu3 %vm270_vm1, %v1585_v11 }
  0x42   :  { %1450 = vmatmul.msk.bf16.gmra.mxu0 %vm270_vm1, %v1562_v12  ;;  %1474 = vmatmul.msk.bf16.gmra.mxu3 %vm270_vm1, %v1586_v13 }
  0x52   :  { %1451 = vmatmul.msk.bf16.gmra.mxu0 %vm270_vm1, %v1563_v14  ;;  %1475 = vmatmul.msk.bf16.gmra.mxu3 %vm270_vm1, %v1587_v15 }
  0x62   :  { %1452 = vmatmul.msk.bf16.gmra.mxu0 %vm270_vm1, %v1564_v16  ;;  %1476 = vmatmul.msk.bf16.gmra.mxu3 %vm270_vm1, %v1588_v17  ;;  %v1570_v16 = vld [vmem:[%s2139_s0 + $0x58] sm:$0xff] }
  0x72   :  { %1453 = vmatmul.msk.bf16.gmra.mxu0 %vm270_vm1, %v1565_v18  ;;  %1477 = vmatmul.msk.bf16.gmra.mxu3 %vm270_vm1, %v1589_v19 }
  0x82   :  { %1454 = vmatmul.msk.bf16.gmra.mxu0 %vm270_vm1, %v1566_v32  ;;  %1478 = vmatmul.msk.bf16.gmra.mxu3 %vm270_vm1, %v1590_v33 }
  0x8f   :  { %v380_v35 = vpop.f32.mrf.mxu0 }
  0x90   :  { %v381_v37 = vadd.f32 %v1771_v36, %v380_v35  ;;  %v1571_v35 = vld [vmem:[%s2139_s0 + $0x60] sm:$0xff] }
  0x92   :  { %1455 = vmatmul.msk.bf16.gmra.mxu0 %vm270_vm1, %v1567_v34  ;;  %v540_v40 = vmul.f32 0.1, %v381_v37 }
  0x94   :  { %v604_v43 = vmax.f32 %v381_v37, %v540_v40 }
  0x95   :  { %v1775_v38 = vpop.f32.mrf.mxu3 }
  0x97   :  { %v382_v39 = vpop.f32.mrf.mxu0 }
  0x98   :  { %v383_v41 = vadd.f32 %v1771_v36, %v382_v39 }
  0x9a   :  { %v541_v42 = vmul.f32 0.1, %v383_v41 }
  0x9c   :  { %v605_v44 = vmax.f32 %v383_v41, %v541_v42 }
  0x9d   :  { %v1778_v45 = vpop.f32.mrf.mxu3 }
  0x9e   :  { %v668_v46 = vpack.c.bf16 %v605_v44, %v604_v43 }
  0x9f   :  { %v385_v48 = vpop.f32.mrf.mxu0 }
  0xa0   :  { %1495 = vmatmul.msk.bf16.vlgmr.msra.gmra.mxu1 %vm730_vm2, %v668_v46  ;;  %1527 = vmatmul.msk.bf16.vlgmr.msra.gmra.mxu2 %vm730_vm2, %v668_v46  ;;  %v386_v49 = vadd.f32 %v1771_v36, %v385_v48 }
  0xa2   :  { %1456 = vmatmul.msk.bf16.gmra.mxu0 %vm270_vm1, %v1568_v47  ;;  %v542_v52 = vmul.f32 0.1, %v386_v49 }
  0xa4   :  { %v606_v56 = vmax.f32 %v386_v49, %v542_v52 }
  0xa5   :  { %v505_v50 = vpop.f32.mrf.mxu3 }
  0xa6   :  { %v506_v54 = vadd.f32 %v1771_v36, %v505_v50 }
  0xa7   :  { %v387_v51 = vpop.f32.mrf.mxu0 }
  0xa8   :  { %v388_v53 = vadd.f32 %v1771_v36, %v387_v51  ;;  %v590_v58 = vmul.f32 0.1, %v506_v54 }
  0xaa   :  { %v543_v55 = vmul.f32 0.1, %v388_v53  ;;  %v654_v0 = vmax.f32 %v506_v54, %v590_v58 }
  0xac   :  { %v607_v57 = vmax.f32 %v388_v53, %v543_v55 }
  0xad   :  { %v507_v59 = vpop.f32.mrf.mxu3 }
  0xae   :  { %v669_v60 = vpack.c.bf16 %v607_v57, %v606_v56  ;;  %v508_v62 = vadd.f32 %v1771_v36, %v507_v59  ;;  %v1572_v57 = vld [vmem:[%s2139_s0 + $0x68] sm:$0xff] }
  0xaf   :  { %v390_v63 = vpop.f32.mrf.mxu0 }
  0xb0   :  { %1496 = vmatmul.msk.bf16.gmra.mxu1 %vm730_vm2, %v669_v60  ;;  %1528 = vmatmul.msk.bf16.gmra.mxu2 %vm730_vm2, %v669_v60  ;;  %v591_v1 = vmul.f32 0.1, %v508_v62  ;;  %v391_v3 = vadd.f32 %v1771_v36, %v390_v63 }
  0xb2   :  { %1457 = vmatmul.msk.bf16.gmra.mxu0 %vm270_vm1, %v1569_v61  ;;  %v655_v2 = vmax.f32 %v508_v62, %v591_v1  ;;  %v544_v7 = vmul.f32 0.1, %v391_v3 }
  0xb4   :  { %v1797_v4 = vpack.c.bf16 %v655_v2, %v654_v0  ;;  %v608_v11 = vmax.f32 %v391_v3, %v544_v7 }
  0xb5   :  { %v510_v5 = vpop.f32.mrf.mxu3 }
  0xb6   :  { %1520 = vmatmul.msk.bf16.vlgmr.msrb.gmra.mxu3 %vm730_vm2, %v1797_v4  ;;  %v511_v9 = vadd.f32 %v1771_v36, %v510_v5 }
  0xb7   :  { %v392_v6 = vpop.f32.mrf.mxu0 }
  0xb8   :  { %v393_v8 = vadd.f32 %v1771_v36, %v392_v6  ;;  %v592_v13 = vmul.f32 0.1, %v511_v9 }
  0xba   :  { %v545_v10 = vmul.f32 0.1, %v393_v8  ;;  %v656_v19 = vmax.f32 %v511_v9, %v592_v13  ;;  %v1573_v13 = vld [vmem:[%s2139_s0 + $0x70] sm:$0xff] }
  0xbc   :  { %v609_v12 = vmax.f32 %v393_v8, %v545_v10 }
  0xbd   :  { %v512_v14 = vpop.f32.mrf.mxu3 }
  0xbe   :  { %v670_v15 = vpack.c.bf16 %v609_v12, %v608_v11  ;;  %v513_v17 = vadd.f32 %v1771_v36, %v512_v14 }
  0xbf   :  { %v395_v18 = vpop.f32.mrf.mxu0 }
  0xc0   :  { %1497 = vmatmul.msk.bf16.gmra.mxu1 %vm730_vm2, %v670_v15  ;;  %1529 = vmatmul.msk.bf16.gmra.mxu2 %vm730_vm2, %v670_v15  ;;  %v593_v20 = vmul.f32 0.1, %v513_v17  ;;  %v396_v22 = vadd.f32 %v1771_v36, %v395_v18 }
  0xc2   :  { %1458 = vmatmul.msk.bf16.gmra.mxu0 %vm270_vm1, %v1570_v16  ;;  %v657_v21 = vmax.f32 %v513_v17, %v593_v20  ;;  %v546_v26 = vmul.f32 0.1, %v396_v22 }
  0xc4   :  { %v1811_v23 = vpack.c.bf16 %v657_v21, %v656_v19  ;;  %v610_v30 = vmax.f32 %v396_v22, %v546_v26 }
  0xc5   :  { %v515_v24 = vpop.f32.mrf.mxu3 }
  0xc6   :  { %1521 = vmatmul.msk.bf16.gmra.mxu3 %vm730_vm2, %v1811_v23  ;;  %v516_v28 = vadd.f32 %v1771_v36, %v515_v24 }
  0xc7   :  { %v397_v25 = vpop.f32.mrf.mxu0 }
  0xc8   :  { %v398_v27 = vadd.f32 %v1771_v36, %v397_v25  ;;  %v594_v32 = vmul.f32 0.1, %v516_v28 }
  0xca   :  { %v547_v29 = vmul.f32 0.1, %v398_v27  ;;  %v658_v40 = vmax.f32 %v516_v28, %v594_v32 }
  0xcc   :  { %v611_v31 = vmax.f32 %v398_v27, %v547_v29 }
  0xcd   :  { %v517_v33 = vpop.f32.mrf.mxu3 }
  0xce   :  { %v671_v34 = vpack.c.bf16 %v611_v31, %v610_v30  ;;  %v518_v37 = vadd.f32 %v1771_v36, %v517_v33  ;;  %v1574_v33 = vld [vmem:[%s2139_s0 + $0x78] sm:$0xff] }
  0xcf   :  { %v400_v39 = vpop.f32.mrf.mxu0 }
  0xd0   :  { %1498 = vmatmul.msk.bf16.gmra.mxu1 %vm730_vm2, %v671_v34  ;;  %1530 = vmatmul.msk.bf16.gmra.mxu2 %vm730_vm2, %v671_v34  ;;  %v595_v41 = vmul.f32 0.1, %v518_v37  ;;  %v401_v43 = vadd.f32 %v1771_v36, %v400_v39 }
  0xd2   :  { %1459 = vmatmul.msk.bf16.gmra.mxu0 %vm270_vm1, %v1571_v35  ;;  %v659_v42 = vmax.f32 %v518_v37, %v595_v41  ;;  %v548_v48 = vmul.f32 0.1, %v401_v43 }
  0xd4   :  { %v1825_v44 = vpack.c.bf16 %v659_v42, %v658_v40  ;;  %v612_v52 = vmax.f32 %v401_v43, %v548_v48 }
  0xd5   :  { %v520_v46 = vpop.f32.mrf.mxu3 }
  0xd6   :  { %1522 = vmatmul.msk.bf16.gmra.mxu3 %vm730_vm2, %v1825_v44  ;;  %v521_v50 = vadd.f32 %v1771_v36, %v520_v46 }
  0xd7   :  { %v402_v47 = vpop.f32.mrf.mxu0 }
  0xd8   :  { %v403_v49 = vadd.f32 %v1771_v36, %v402_v47  ;;  %v596_v54 = vmul.f32 0.1, %v521_v50 }
  0xda   :  { %v549_v51 = vmul.f32 0.1, %v403_v49  ;;  %v660_v60 = vmax.f32 %v521_v50, %v596_v54 }
  0xdc   :  { %v613_v53 = vmax.f32 %v403_v49, %v549_v51 }
  0xdd   :  { %v522_v55 = vpop.f32.mrf.mxu3 }
  0xde   :  { %v672_v56 = vpack.c.bf16 %v613_v53, %v612_v52  ;;  %v523_v58 = vadd.f32 %v1771_v36, %v522_v55 }
  0xdf   :  { %v405_v59 = vpop.f32.mrf.mxu0 }
  0xe0   :  { %1499 = vmatmul.msk.bf16.gmra.mxu1 %vm730_vm2, %v672_v56  ;;  %1531 = vmatmul.msk.bf16.gmra.mxu2 %vm730_vm2, %v672_v56  ;;  %v597_v61 = vmul.f32 0.1, %v523_v58  ;;  %v406_v63 = vadd.f32 %v1771_v36, %v405_v59  ;;  %v1575_v56 = vld [vmem:[%s2139_s0 + $0x80] sm:$0xff] }
  0xe2   :  { %1460 = vmatmul.msk.bf16.gmra.mxu0 %vm270_vm1, %v1572_v57  ;;  %v661_v62 = vmax.f32 %v523_v58, %v597_v61  ;;  %v550_v3 = vmul.f32 0.1, %v406_v63 }
  0xe4   :  { %v1839_v0 = vpack.c.bf16 %v661_v62, %v660_v60  ;;  %v614_v8 = vmax.f32 %v406_v63, %v550_v3 }
  0xe5   :  { %v525_v1 = vpop.f32.mrf.mxu3 }
  0xe6   :  { %1523 = vmatmul.msk.bf16.gmra.mxu3 %vm730_vm2, %v1839_v0  ;;  %v526_v6 = vadd.f32 %v1771_v36, %v525_v1 }
  0xe7   :  { %v407_v2 = vpop.f32.mrf.mxu0 }
  0xe8   :  { %v408_v5 = vadd.f32 %v1771_v36, %v407_v2  ;;  %v598_v10 = vmul.f32 0.1, %v526_v6  ;;  %v704_v2 = vld [vmem:[%s2143_s4] sm:$0x3] }
  0xea   :  { %v551_v7 = vmul.f32 0.1, %v408_v5  ;;  %v662_v16 = vmax.f32 %v526_v6, %v598_v10 }
  0xec   :  { %v615_v9 = vmax.f32 %v408_v5, %v551_v7  ;;  %v1889_v7 = vperm.slane %v704_v2, 0 }
  0xed   :  { %v527_v11 = vpop.f32.mrf.mxu3 }
  0xee   :  { %v673_v12 = vpack.c.bf16 %v615_v9, %v614_v8  ;;  %v528_v14 = vadd.f32 %v1771_v36, %v527_v11 }
  0xef   :  { %v410_v15 = vpop.f32.mrf.mxu0 }
  0xf0   :  { %1500 = vmatmul.msk.bf16.gmra.mxu1 %vm730_vm2, %v673_v12  ;;  %1532 = vmatmul.msk.bf16.gmra.mxu2 %vm730_vm2, %v673_v12  ;;  %v599_v17 = vmul.f32 0.1, %v528_v14  ;;  %v411_v19 = vadd.f32 %v1771_v36, %v410_v15  ;;  %v1897_v15 = vperm.slane %v704_v2, 1 }
  0xf2   :  { %1461 = vmatmul.msk.bf16.gmra.mxu0 %vm270_vm1, %v1573_v13  ;;  %v663_v18 = vmax.f32 %v528_v14, %v599_v17  ;;  %v552_v24 = vmul.f32 0.1, %v411_v19  ;;  %v1576_v13 = vld [vmem:[%s2139_s0 + $0x88] sm:$0xff] }
  0xf4   :  { %v1853_v20 = vpack.c.bf16 %v663_v18, %v662_v16  ;;  %v616_v28 = vmax.f32 %v411_v19, %v552_v24 }
  0xf5   :  { %v530_v21 = vpop.f32.mrf.mxu3 }
  0xf6   :  { %1524 = vmatmul.msk.bf16.gmra.mxu3 %vm730_vm2, %v1853_v20  ;;  %v531_v26 = vadd.f32 %v1771_v36, %v530_v21 }
  0xf7   :  { %v412_v22 = vpop.f32.mrf.mxu0 }
  0xf8   :  { %v413_v25 = vadd.f32 %v1771_v36, %v412_v22  ;;  %v600_v30 = vmul.f32 0.1, %v531_v26 }
  0xfa   :  { %v553_v27 = vmul.f32 0.1, %v413_v25  ;;  %v664_v37 = vmax.f32 %v531_v26, %v600_v30 }
  0xfc   :  { %v617_v29 = vmax.f32 %v413_v25, %v553_v27 }
  0xfd   :  { %v532_v31 = vpop.f32.mrf.mxu3 }
  0xfe   :  { %v674_v32 = vpack.c.bf16 %v617_v29, %v616_v28  ;;  %v533_v34 = vadd.f32 %v1771_v36, %v532_v31 }
  0xff   :  { %v415_v35 = vpop.f32.mrf.mxu0 }
 0x100   :  { %1501 = vmatmul.msk.bf16.gmra.mxu1 %vm730_vm2, %v674_v32  ;;  %1533 = vmatmul.msk.bf16.gmra.mxu2 %vm730_vm2, %v674_v32  ;;  %v601_v39 = vmul.f32 0.1, %v533_v34  ;;  %v416_v41 = vadd.f32 %v1771_v36, %v415_v35 }
 0x102   :  { %1462 = vmatmul.msk.bf16.gmra.mxu0 %vm270_vm1, %v1574_v33  ;;  %v665_v40 = vmax.f32 %v533_v34, %v601_v39  ;;  %v554_v47 = vmul.f32 0.1, %v416_v41 }
 0x104   :  { %v1867_v42 = vpack.c.bf16 %v665_v40, %v664_v37  ;;  %v618_v51 = vmax.f32 %v416_v41, %v554_v47 }
 0x105   :  { %v535_v43 = vpop.f32.mrf.mxu3 }
 0x106   :  { %1525 = vmatmul.msk.bf16.gmra.mxu3 %vm730_vm2, %v1867_v42  ;;  %v536_v49 = vadd.f32 %v1771_v36, %v535_v43 }
 0x107   :  { %v417_v46 = vpop.f32.mrf.mxu0 }
 0x108   :  { %v418_v48 = vadd.f32 %v1771_v36, %v417_v46  ;;  %v602_v53 = vmul.f32 0.1, %v536_v49 }
 0x10a   :  { %v555_v50 = vmul.f32 0.1, %v418_v48  ;;  %v666_v59 = vmax.f32 %v536_v49, %v602_v53 }
 0x10c   :  { %v619_v52 = vmax.f32 %v418_v48, %v555_v50 }
 0x10d   :  { %v537_v54 = vpop.f32.mrf.mxu3 }
 0x10e   :  { %v675_v55 = vpack.c.bf16 %v619_v52, %v618_v51  ;;  %v538_v57 = vadd.f32 %v1771_v36, %v537_v54 }
 0x10f   :  { %v420_v58 = vpop.f32.mrf.mxu0 }
 0x110   :  { %1502 = vmatmul.msk.bf16.gmra.mxu1 %vm730_vm2, %v675_v55  ;;  %1534 = vmatmul.msk.bf16.gmra.mxu2 %vm730_vm2, %v675_v55  ;;  %v603_v60 = vmul.f32 0.1, %v538_v57  ;;  %v421_v62 = vadd.f32 %v1771_v36, %v420_v58 }
 0x112   :  { %1463 = vmatmul.msk.bf16.gmra.mxu0 %vm270_vm1, %v1575_v56  ;;  %v667_v61 = vmax.f32 %v538_v57, %v603_v60  ;;  %v556_v3 = vmul.f32 0.1, %v421_v62  ;;  %v1578_v57 = vld [vmem:[%s2139_s0 + $0x98] sm:$0xff] }
 0x114   :  { %v1881_v63 = vpack.c.bf16 %v667_v61, %v666_v59  ;;  %v620_v8 = vmax.f32 %v421_v62, %v556_v3 }
 0x116   :  { %1526 = vmatmul.msk.bf16.gmra.mxu3 %vm730_vm2, %v1881_v63 }
 0x117   :  { %v422_v1 = vpop.f32.mrf.mxu0 }
 0x118   :  { %v423_v5 = vadd.f32 %v1771_v36, %v422_v1 }
 0x11a   :  { %v557_v6 = vmul.f32 0.1, %v423_v5 }
 0x11c   :  { %v621_v9 = vmax.f32 %v423_v5, %v557_v6 }
 0x11d   :  { %v836_v10 = vpop.f32.mrf.mxu1 }
 0x11e   :  { %v837_v11 = vadd.f32 %v836_v10, %v1889_v7  ;;  %v676_v12 = vpack.c.bf16 %v621_v9, %v620_v8 }
 0x11f   :  { %v425_v14 = vpop.f32.mrf.mxu0 }
 0x120   :  { %1165 = vst [vmem:[#allocation2] sm:$0xff] %v837_v11  ;;  %1503 = vmatmul.msk.bf16.gmra.mxu1 %vm730_vm2, %v676_v12  ;;  %1535 = vmatmul.msk.bf16.gmra.mxu2 %vm730_vm2, %v676_v12  ;;  %v426_v17 = vadd.f32 %v1771_v36, %v425_v14 }
 0x122   :  { %1464 = vmatmul.msk.bf16.gmra.mxu0 %vm270_vm1, %v1576_v13  ;;  %v558_v24 = vmul.f32 0.1, %v426_v17 }
 0x123   :  { %v1005_v16 = vpop.f32.mrf.mxu2 }
 0x124   :  { %v1006_v18 = vadd.f32 %v1005_v16, %v1897_v15  ;;  %v622_v28 = vmax.f32 %v426_v17, %v558_v24 }
 0x125   :  { %v838_v19 = vpop.f32.mrf.mxu1 }
 0x126   :  { %1166 = vst [vmem:[#allocation2 + $0x8] sm:$0xff] %v1006_v18  ;;  %v839_v21 = vadd.f32 %v838_v19, %v1889_v7  ;;  %1552 = vmatmul.msk.bf16.vlgmr.msra.gmra.mxu3 %vm730_vm2, %v1797_v4  ;;  %v1577_v4 = vld [vmem:[%s2139_s0 + $0x90] sm:$0xff]  ;;  %v1579_v19 = vld [vmem:[%s2139_s0 + $0xa0] sm:$0xff] }
 0x127   :  { %v427_v22 = vpop.f32.mrf.mxu0 }
 0x128   :  { %1167 = vst [vmem:[#allocation2 + $0x10] sm:$0xff] %v839_v21  ;;  %v428_v25 = vadd.f32 %v1771_v36, %v427_v22 }
 0x12a   :  { %v559_v26 = vmul.f32 0.1, %v428_v25 }
 0x12b   :  { %v1007_v27 = vpop.f32.mrf.mxu2 }
 0x12c   :  { %v623_v29 = vmax.f32 %v428_v25, %v559_v26  ;;  %v1008_v30 = vadd.f32 %v1007_v27, %v1897_v15 }
 0x12d   :  { %v841_v31 = vpop.f32.mrf.mxu1 }
 0x12e   :  { %1168 = vst [vmem:[#allocation2 + $0x18] sm:$0xff] %v1008_v30  ;;  %v842_v32 = vadd.f32 %v841_v31, %v1889_v7  ;;  %v677_v33 = vpack.c.bf16 %v623_v29, %v622_v28 }
 0x12f   :  { %v430_v34 = vpop.f32.mrf.mxu0 }
 0x130   :  { %1169 = vst [vmem:[#allocation2 + $0x20] sm:$0xff] %v842_v32  ;;  %1504 = vmatmul.msk.bf16.gmra.mxu1 %vm730_vm2, %v677_v33  ;;  %1536 = vmatmul.msk.bf16.gmra.mxu2 %vm730_vm2, %v677_v33  ;;  %v431_v37 = vadd.f32 %v1771_v36, %v430_v34 }
 0x132   :  { %1465 = vmatmul.msk.bf16.gmra.mxu0 %vm270_vm1, %v1577_v4  ;;  %v560_v46 = vmul.f32 0.1, %v431_v37 }
 0x133   :  { %v1010_v35 = vpop.f32.mrf.mxu2 }
 0x134   :  { %v1011_v39 = vadd.f32 %v1010_v35, %v1897_v15  ;;  %v624_v52 = vmax.f32 %v431_v37, %v560_v46  ;;  %v1580_v46 = vld [vmem:[%s2139_s0 + $0xa8] sm:$0xff] }
 0x135   :  { %v843_v40 = vpop.f32.mrf.mxu1 }
 0x136   :  { %1170 = vst [vmem:[#allocation2 + $0x28] sm:$0xff] %v1011_v39  ;;  %v844_v41 = vadd.f32 %v843_v40, %v1889_v7  ;;  %1553 = vmatmul.msk.bf16.gmra.mxu3 %vm730_vm2, %v1811_v23 }
 0x137   :  { %v432_v43 = vpop.f32.mrf.mxu0 }
 0x138   :  { %1171 = vst [vmem:[#allocation2 + $0x30] sm:$0xff] %v844_v41  ;;  %v433_v47 = vadd.f32 %v1771_v36, %v432_v43 }
 0x139   :  { %v961_v48 = vpop.f32.mrf.mxu3 }
 0x13a   :  { %v561_v49 = vmul.f32 0.1, %v433_v47  ;;  %v962_v50 = vadd.f32 %v961_v48, %v1889_v7 }
 0x13b   :  { %v1012_v51 = vpop.f32.mrf.mxu2 }
 0x13c   :  { %v625_v53 = vmax.f32 %v433_v47, %v561_v49  ;;  %v1013_v54 = vadd.f32 %v1012_v51, %v1897_v15  ;;  %1265 = vst [vmem:[#allocation2 + $0x320] sm:$0xff] %v962_v50 }
 0x13d   :  { %v846_v55 = vpop.f32.mrf.mxu1 }
 0x13e   :  { %1172 = vst [vmem:[#allocation2 + $0x38] sm:$0xff] %v1013_v54  ;;  %v847_v56 = vadd.f32 %v846_v55, %v1889_v7  ;;  %v678_v23 = vpack.c.bf16 %v625_v53, %v624_v52 }
 0x13f   :  { %v435_v58 = vpop.f32.mrf.mxu0 }
 0x140   :  { %1173 = vst [vmem:[#allocation2 + $0x40] sm:$0xff] %v847_v56  ;;  %1505 = vmatmul.msk.bf16.gmra.mxu1 %vm730_vm2, %v678_v23  ;;  %1537 = vmatmul.msk.bf16.gmra.mxu2 %vm730_vm2, %v678_v23  ;;  %v436_v62 = vadd.f32 %v1771_v36, %v435_v58 }
 0x141   :  { %v963_v59 = vpop.f32.mrf.mxu3 }
 0x142   :  { %1466 = vmatmul.msk.bf16.gmra.mxu0 %vm270_vm1, %v1578_v57  ;;  %v964_v60 = vadd.f32 %v963_v59, %v1889_v7  ;;  %v562_v6 = vmul.f32 0.1, %v436_v62 }
 0x143   :  { %v1015_v61 = vpop.f32.mrf.mxu2 }
 0x144   :  { %v1016_v1 = vadd.f32 %v1015_v61, %v1897_v15  ;;  %1267 = vst [vmem:[#allocation2 + $0x330] sm:$0xff] %v964_v60  ;;  %v626_v13 = vmax.f32 %v436_v62, %v562_v6 }
 0x145   :  { %v848_v2 = vpop.f32.mrf.mxu1 }
 0x146   :  { %1174 = vst [vmem:[#allocation2 + $0x48] sm:$0xff] %v1016_v1  ;;  %v849_v3 = vadd.f32 %v848_v2, %v1889_v7  ;;  %1554 = vmatmul.msk.bf16.gmra.mxu3 %vm730_vm2, %v1825_v44 }
 0x147   :  { %v437_v5 = vpop.f32.mrf.mxu0 }
 0x148   :  { %1175 = vst [vmem:[#allocation2 + $0x50] sm:$0xff] %v849_v3  ;;  %v438_v8 = vadd.f32 %v1771_v36, %v437_v5  ;;  %v1581_v5 = vld [vmem:[%s2139_s0 + $0xb0] sm:$0xff] }
 0x149   :  { %v966_v9 = vpop.f32.mrf.mxu3 }
 0x14a   :  { %v563_v10 = vmul.f32 0.1, %v438_v8  ;;  %v967_v11 = vadd.f32 %v966_v9, %v1889_v7 }
 0x14b   :  { %v1017_v12 = vpop.f32.mrf.mxu2 }
 0x14c   :  { %v627_v14 = vmax.f32 %v438_v8, %v563_v10  ;;  %v1018_v16 = vadd.f32 %v1017_v12, %v1897_v15  ;;  %1269 = vst [vmem:[#allocation2 + $0x340] sm:$0xff] %v967_v11 }
 0x14d   :  { %v851_v17 = vpop.f32.mrf.mxu1 }
 0x14e   :  { %1176 = vst [vmem:[#allocation2 + $0x58] sm:$0xff] %v1018_v16  ;;  %v852_v18 = vadd.f32 %v851_v17, %v1889_v7  ;;  %v679_v44 = vpack.c.bf16 %v627_v14, %v626_v13 }
 0x14f   :  { %v440_v21 = vpop.f32.mrf.mxu0 }
 0x150   :  { %1177 = vst [vmem:[#allocation2 + $0x60] sm:$0xff] %v852_v18  ;;  %1506 = vmatmul.msk.bf16.gmra.mxu1 %vm730_vm2, %v679_v44  ;;  %1538 = vmatmul.msk.bf16.gmra.mxu2 %vm730_vm2, %v679_v44  ;;  %v441_v26 = vadd.f32 %v1771_v36, %v440_v21 }
 0x151   :  { %v968_v22 = vpop.f32.mrf.mxu3 }
 0x152   :  { %1467 = vmatmul.msk.bf16.gmra.mxu0 %vm270_vm1, %v1579_v19  ;;  %v969_v24 = vadd.f32 %v968_v22, %v1889_v7  ;;  %v564_v31 = vmul.f32 0.1, %v441_v26 }
 0x153   :  { %v1020_v25 = vpop.f32.mrf.mxu2 }
 0x154   :  { %v1021_v27 = vadd.f32 %v1020_v25, %v1897_v15  ;;  %1271 = vst [vmem:[#allocation2 + $0x350] sm:$0xff] %v969_v24  ;;  %v628_v37 = vmax.f32 %v441_v26, %v564_v31 }
 0x155   :  { %v853_v28 = vpop.f32.mrf.mxu1 }
 0x156   :  { %1178 = vst [vmem:[#allocation2 + $0x68] sm:$0xff] %v1021_v27  ;;  %v854_v29 = vadd.f32 %v853_v28, %v1889_v7  ;;  %1555 = vmatmul.msk.bf16.gmra.mxu3 %vm730_vm2, %v1839_v0 }
 0x157   :  { %v442_v30 = vpop.f32.mrf.mxu0 }
 0x158   :  { %1179 = vst [vmem:[#allocation2 + $0x70] sm:$0xff] %v854_v29  ;;  %v443_v32 = vadd.f32 %v1771_v36, %v442_v30  ;;  %v1582_v29 = vld [vmem:[%s2139_s0 + $0xb8] sm:$0xff] }
 0x159   :  { %v971_v33 = vpop.f32.mrf.mxu3 }
 0x15a   :  { %v565_v4 = vmul.f32 0.1, %v443_v32  ;;  %v972_v34 = vadd.f32 %v971_v33, %v1889_v7 }
 0x15b   :  { %v1022_v35 = vpop.f32.mrf.mxu2 }
 0x15c   :  { %v629_v39 = vmax.f32 %v443_v32, %v565_v4  ;;  %v1023_v40 = vadd.f32 %v1022_v35, %v1897_v15  ;;  %1273 = vst [vmem:[#allocation2 + $0x360] sm:$0xff] %v972_v34 }
 0x15d   :  { %v856_v41 = vpop.f32.mrf.mxu1 }
 0x15e   :  { %v680_v43 = vpack.c.bf16 %v629_v39, %v628_v37  ;;  %1180 = vst [vmem:[#allocation2 + $0x78] sm:$0xff] %v1023_v40  ;;  %v857_v0 = vadd.f32 %v856_v41, %v1889_v7 }
 0x15f   :  { %v445_v47 = vpop.f32.mrf.mxu0 }
 0x160   :  { %1181 = vst [vmem:[#allocation2 + $0x80] sm:$0xff] %v857_v0  ;;  %1507 = vmatmul.msk.bf16.gmra.mxu1 %vm730_vm2, %v680_v43  ;;  %1539 = vmatmul.msk.bf16.gmra.mxu2 %vm730_vm2, %v680_v43  ;;  %v446_v51 = vadd.f32 %v1771_v36, %v445_v47 }
 0x161   :  { %v973_v48 = vpop.f32.mrf.mxu3 }
 0x162   :  { %1468 = vmatmul.msk.bf16.gmra.mxu0 %vm270_vm1, %v1580_v46  ;;  %v974_v49 = vadd.f32 %v973_v48, %v1889_v7  ;;  %v566_v56 = vmul.f32 0.1, %v446_v51 }
 0x163   :  { %v1025_v50 = vpop.f32.mrf.mxu2 }
 0x164   :  { %v1026_v52 = vadd.f32 %v1025_v50, %v1897_v15  ;;  %1275 = vst [vmem:[#allocation2 + $0x370] sm:$0xff] %v974_v49  ;;  %v630_v61 = vmax.f32 %v446_v51, %v566_v56 }
 0x165   :  { %v858_v53 = vpop.f32.mrf.mxu1 }
 0x166   :  { %1182 = vst [vmem:[#allocation2 + $0x88] sm:$0xff] %v1026_v52  ;;  %v859_v54 = vadd.f32 %v858_v53, %v1889_v7  ;;  %1556 = vmatmul.msk.bf16.gmra.mxu3 %vm730_vm2, %v1853_v20 }
 0x167   :  { %v447_v55 = vpop.f32.mrf.mxu0 }
 0x168   :  { %1183 = vst [vmem:[#allocation2 + $0x90] sm:$0xff] %v859_v54  ;;  %v448_v23 = vadd.f32 %v1771_v36, %v447_v55 }
 0x169   :  { %v976_v57 = vpop.f32.mrf.mxu3 }
 0x16a   :  { %v567_v58 = vmul.f32 0.1, %v448_v23  ;;  %v977_v59 = vadd.f32 %v976_v57, %v1889_v7 }
 0x16b   :  { %v1027_v60 = vpop.f32.mrf.mxu2 }
 0x16c   :  { %v631_v62 = vmax.f32 %v448_v23, %v567_v58  ;;  %v1028_v1 = vadd.f32 %v1027_v60, %v1897_v15  ;;  %1277 = vst [vmem:[#allocation2 + $0x380] sm:$0xff] %v977_v59 }
 0x16d   :  { %v861_v2 = vpop.f32.mrf.mxu1 }
 0x16e   :  { %v681_v3 = vpack.c.bf16 %v631_v62, %v630_v61  ;;  %1184 = vst [vmem:[#allocation2 + $0x98] sm:$0xff] %v1028_v1  ;;  %v862_v20 = vadd.f32 %v861_v2, %v1889_v7 }
 0x16f   :  { %v450_v6 = vpop.f32.mrf.mxu0 }
 0x170   :  { %1185 = vst [vmem:[#allocation2 + $0xa0] sm:$0xff] %v862_v20  ;;  %1508 = vmatmul.msk.bf16.gmra.mxu1 %vm730_vm2, %v681_v3  ;;  %1540 = vmatmul.msk.bf16.gmra.mxu2 %vm730_vm2, %v681_v3  ;;  %v451_v11 = vadd.f32 %v1771_v36, %v450_v6 }
 0x171   :  { %v978_v8 = vpop.f32.mrf.mxu3 }
 0x172   :  { %1469 = vmatmul.msk.bf16.gmra.mxu0 %vm270_vm1, %v1581_v5  ;;  %v979_v9 = vadd.f32 %v978_v8, %v1889_v7  ;;  %v568_v17 = vmul.f32 0.1, %v451_v11 }
 0x173   :  { %v1030_v10 = vpop.f32.mrf.mxu2 }
 0x174   :  { %v1031_v12 = vadd.f32 %v1030_v10, %v1897_v15  ;;  %1279 = vst [vmem:[#allocation2 + $0x390] sm:$0xff] %v979_v9  ;;  %v632_v24 = vmax.f32 %v451_v11, %v568_v17 }
 0x175   :  { %v863_v13 = vpop.f32.mrf.mxu1 }
 0x176   :  { %1186 = vst [vmem:[#allocation2 + $0xa8] sm:$0xff] %v1031_v12  ;;  %v864_v14 = vadd.f32 %v863_v13, %v1889_v7  ;;  %1557 = vmatmul.msk.bf16.gmra.mxu3 %vm730_vm2, %v1867_v42 }
 0x177   :  { %v452_v16 = vpop.f32.mrf.mxu0 }
 0x178   :  { %1187 = vst [vmem:[#allocation2 + $0xb0] sm:$0xff] %v864_v14  ;;  %v453_v18 = vadd.f32 %v1771_v36, %v452_v16 }
 0x179   :  { %v981_v44 = vpop.f32.mrf.mxu3 }
 0x17a   :  { %v569_v19 = vmul.f32 0.1, %v453_v18  ;;  %v982_v21 = vadd.f32 %v981_v44, %v1889_v7 }
 0x17b   :  { %v1032_v22 = vpop.f32.mrf.mxu2 }
 0x17c   :  { %v633_v25 = vmax.f32 %v453_v18, %v569_v19  ;;  %v1033_v26 = vadd.f32 %v1032_v22, %v1897_v15  ;;  %1281 = vst [vmem:[#allocation2 + $0x3a0] sm:$0xff] %v982_v21 }
 0x17d   :  { %v866_v27 = vpop.f32.mrf.mxu1 }
 0x17e   :  { %v682_v28 = vpack.c.bf16 %v633_v25, %v632_v24  ;;  %1188 = vst [vmem:[#allocation2 + $0xb8] sm:$0xff] %v1033_v26  ;;  %v867_v42 = vadd.f32 %v866_v27, %v1889_v7 }
 0x17f   :  { %v455_v30 = vpop.f32.mrf.mxu0 }
 0x180   :  { %1189 = vst [vmem:[#allocation2 + $0xc0] sm:$0xff] %v867_v42  ;;  %1509 = vmatmul.msk.bf16.gmra.mxu1 %vm730_vm2, %v682_v28  ;;  %1541 = vmatmul.msk.bf16.gmra.mxu2 %vm730_vm2, %v682_v28  ;;  %v456_v4 = vadd.f32 %v1771_v36, %v455_v30 }
 0x181   :  { %v983_v31 = vpop.f32.mrf.mxu3 }
 0x182   :  { %1470 = vmatmul.msk.bf16.gmra.mxu0 %vm270_vm1, %v1582_v29  ;;  %v984_v32 = vadd.f32 %v983_v31, %v1889_v7  ;;  %v570_v40 = vmul.f32 0.1, %v456_v4 }
 0x183   :  { %v1035_v33 = vpop.f32.mrf.mxu2 }
 0x184   :  { %v1036_v34 = vadd.f32 %v1035_v33, %v1897_v15  ;;  %1283 = vst [vmem:[#allocation2 + $0x3b0] sm:$0xff] %v984_v32  ;;  %v634_v48 = vmax.f32 %v456_v4, %v570_v40 }
 0x185   :  { %v868_v35 = vpop.f32.mrf.mxu1 }
 0x186   :  { %1190 = vst [vmem:[#allocation2 + $0xc8] sm:$0xff] %v1036_v34  ;;  %v869_v37 = vadd.f32 %v868_v35, %v1889_v7  ;;  %1558 = vmatmul.msk.bf16.gmra.mxu3 %vm730_vm2, %v1881_v63 }
 0x187   :  { %v457_v39 = vpop.f32.mrf.mxu0 }
 0x188   :  { %1191 = vst [vmem:[#allocation2 + $0xd0] sm:$0xff] %v869_v37  ;;  %v458_v41 = vadd.f32 %v1771_v36, %v457_v39 }
 0x189   :  { %v986_v43 = vpop.f32.mrf.mxu3 }
 0x18a   :  { %v571_v0 = vmul.f32 0.1, %v458_v41  ;;  %v987_v46 = vadd.f32 %v986_v43, %v1889_v7 }
 0x18b   :  { %v1037_v47 = vpop.f32.mrf.mxu2 }
 0x18c   :  { %v635_v49 = vmax.f32 %v458_v41, %v571_v0  ;;  %v1038_v50 = vadd.f32 %v1037_v47, %v1897_v15  ;;  %1285 = vst [vmem:[#allocation2 + $0x3c0] sm:$0xff] %v987_v46 }
 0x18d   :  { %v871_v51 = vpop.f32.mrf.mxu1 }
 0x18e   :  { %v683_v52 = vpack.c.bf16 %v635_v49, %v634_v48  ;;  %1192 = vst [vmem:[#allocation2 + $0xd8] sm:$0xff] %v1038_v50  ;;  %v872_v63 = vadd.f32 %v871_v51, %v1889_v7 }
 0x18f   :  { %v460_v53 = vpop.f32.mrf.mxu0 }
 0x190   :  { %1193 = vst [vmem:[#allocation2 + $0xe0] sm:$0xff] %v872_v63  ;;  %1510 = vmatmul.msk.bf16.gmra.mxu1 %vm730_vm2, %v683_v52  ;;  %1542 = vmatmul.msk.bf16.gmra.mxu2 %vm730_vm2, %v683_v52  ;;  %v461_v23 = vadd.f32 %v1771_v36, %v460_v53 }
 0x191   :  { %v988_v54 = vpop.f32.mrf.mxu3 }
 0x192   :  { %v989_v55 = vadd.f32 %v988_v54, %v1889_v7  ;;  %v572_v61 = vmul.f32 0.1, %v461_v23 }
 0x193   :  { %v1040_v56 = vpop.f32.mrf.mxu2 }
 0x194   :  { %v1041_v57 = vadd.f32 %v1040_v56, %v1897_v15  ;;  %1287 = vst [vmem:[#allocation2 + $0x3d0] sm:$0xff] %v989_v55  ;;  %v636_v5 = vmax.f32 %v461_v23, %v572_v61 }
 0x195   :  { %v873_v58 = vpop.f32.mrf.mxu1 }
 0x196   :  { %1194 = vst [vmem:[#allocation2 + $0xe8] sm:$0xff] %v1041_v57  ;;  %v874_v59 = vadd.f32 %v873_v58, %v1889_v7 }
 0x197   :  { %v462_v60 = vpop.f32.mrf.mxu0 }
 0x198   :  { %1195 = vst [vmem:[#allocation2 + $0xf0] sm:$0xff] %v874_v59  ;;  %v463_v62 = vadd.f32 %v1771_v36, %v462_v60 }
 0x199   :  { %v991_v1 = vpop.f32.mrf.mxu3 }
 0x19a   :  { %v573_v2 = vmul.f32 0.1, %v463_v62  ;;  %v992_v3 = vadd.f32 %v991_v1, %v1889_v7 }
 0x19b   :  { %v1042_v20 = vpop.f32.mrf.mxu2 }
 0x19c   :  { %v637_v6 = vmax.f32 %v463_v62, %v573_v2  ;;  %v1043_v8 = vadd.f32 %v1042_v20, %v1897_v15  ;;  %1289 = vst [vmem:[#allocation2 + $0x3e0] sm:$0xff] %v992_v3 }
 0x19d   :  { %v876_v9 = vpop.f32.mrf.mxu1 }
 0x19e   :  { %v684_v10 = vpack.c.bf16 %v637_v6, %v636_v5  ;;  %1196 = vst [vmem:[#allocation2 + $0xf8] sm:$0xff] %v1043_v8  ;;  %v877_v11 = vadd.f32 %v876_v9, %v1889_v7 }
 0x19f   :  { %v465_v12 = vpop.f32.mrf.mxu0 }
 0x1a0   :  { %1197 = vst [vmem:[#allocation2 + $0x100] sm:$0xff] %v877_v11  ;;  %1511 = vmatmul.msk.bf16.gmra.mxu1 %vm730_vm2, %v684_v10  ;;  %1543 = vmatmul.msk.bf16.gmra.mxu2 %vm730_vm2, %v684_v10  ;;  %v466_v17 = vadd.f32 %v1771_v36, %v465_v12 }
 0x1a1   :  { %v993_v13 = vpop.f32.mrf.mxu3 }
 0x1a2   :  { %v994_v14 = vadd.f32 %v993_v13, %v1889_v7  ;;  %v574_v22 = vmul.f32 0.1, %v466_v17 }
 0x1a3   :  { %v1045_v16 = vpop.f32.mrf.mxu2 }
 0x1a4   :  { %v1046_v18 = vadd.f32 %v1045_v16, %v1897_v15  ;;  %1291 = vst [vmem:[#allocation2 + $0x3f0] sm:$0xff] %v994_v14  ;;  %v638_v42 = vmax.f32 %v466_v17, %v574_v22 }
 0x1a5   :  { %v878_v44 = vpop.f32.mrf.mxu1 }
 0x1a6   :  { %1198 = vst [vmem:[#allocation2 + $0x108] sm:$0xff] %v1046_v18  ;;  %v879_v19 = vadd.f32 %v878_v44, %v1889_v7 }
 0x1a7   :  { %v467_v21 = vpop.f32.mrf.mxu0 }
 0x1a8   :  { %1199 = vst [vmem:[#allocation2 + $0x110] sm:$0xff] %v879_v19  ;;  %v468_v24 = vadd.f32 %v1771_v36, %v467_v21  ;;  %v2049_v19 = vld [vmem:[%s2141_s2] ss:$0 sm:$0xff]  ;;  %s1635_s2 = smov [#allocation2]  }
 0x1a9   :  { %v1130_v25 = vpop.f32.mrf.mxu3  ;;  %s1297_s28 = sshll.u32 %s1635_s2, 4  ;;  %s1298_s28 = int_to_ptr.vmem [resolvable:$true] %s1297_s28 }
 0x1aa   :  { %v575_v26 = vmul.f32 0.1, %v468_v24  ;;  %v1131_v27 = vadd.f32 %v1130_v25, %v1897_v15 }
 0x1ab   :  { %v1047_v28 = vpop.f32.mrf.mxu2 }
 0x1ac   :  { %v639_v29 = vmax.f32 %v468_v24, %v575_v26  ;;  %v1048_v30 = vadd.f32 %v1047_v28, %v1897_v15  ;;  %1266 = vst [vmem:[#allocation2 + $0x328] sm:$0xff] %v1131_v27 }
 0x1ad   :  { %v881_v31 = vpop.f32.mrf.mxu1 }
 0x1ae   :  { %v685_v32 = vpack.c.bf16 %v639_v29, %v638_v42  ;;  %1200 = vst [vmem:[#allocation2 + $0x118] sm:$0xff] %v1048_v30  ;;  %v882_v33 = vadd.f32 %v881_v31, %v1889_v7 }
 0x1af   :  { %v470_v4 = vpop.f32.mrf.mxu0 }
 0x1b0   :  { %1201 = vst [vmem:[#allocation2 + $0x120] sm:$0xff] %v882_v33  ;;  %1512 = vmatmul.msk.bf16.gmra.mxu1 %vm730_vm2, %v685_v32  ;;  %1544 = vmatmul.msk.bf16.gmra.mxu2 %vm730_vm2, %v685_v32  ;;  %v471_v39 = vadd.f32 %v1771_v36, %v470_v4 }
 0x1b1   :  { %v1132_v34 = vpop.f32.mrf.mxu3 }
 0x1b2   :  { %v1133_v35 = vadd.f32 %v1132_v34, %v1897_v15  ;;  %v576_v46 = vmul.f32 0.1, %v471_v39 }
 0x1b3   :  { %v1050_v37 = vpop.f32.mrf.mxu2 }
 0x1b4   :  { %v1051_v40 = vadd.f32 %v1050_v37, %v1897_v15  ;;  %1268 = vst [vmem:[#allocation2 + $0x338] sm:$0xff] %v1133_v35  ;;  %v640_v52 = vmax.f32 %v471_v39, %v576_v46 }
 0x1b5   :  { %v883_v41 = vpop.f32.mrf.mxu1 }
 0x1b6   :  { %1202 = vst [vmem:[#allocation2 + $0x128] sm:$0xff] %v1051_v40  ;;  %v884_v43 = vadd.f32 %v883_v41, %v1889_v7 }
 0x1b7   :  { %v472_v0 = vpop.f32.mrf.mxu0 }
 0x1b8   :  { %1203 = vst [vmem:[#allocation2 + $0x130] sm:$0xff] %v884_v43  ;;  %v473_v47 = vadd.f32 %v1771_v36, %v472_v0 }
 0x1b9   :  { %v1135_v48 = vpop.f32.mrf.mxu3 }
 0x1ba   :  { %v577_v49 = vmul.f32 0.1, %v473_v47  ;;  %v1136_v50 = vadd.f32 %v1135_v48, %v1897_v15 }
 0x1bb   :  { %v1052_v51 = vpop.f32.mrf.mxu2 }
 0x1bc   :  { %v641_v63 = vmax.f32 %v473_v47, %v577_v49  ;;  %v1053_v53 = vadd.f32 %v1052_v51, %v1897_v15  ;;  %1270 = vst [vmem:[#allocation2 + $0x348] sm:$0xff] %v1136_v50 }
 0x1bd   :  { %v886_v54 = vpop.f32.mrf.mxu1 }
 0x1be   :  { %v686_v55 = vpack.c.bf16 %v641_v63, %v640_v52  ;;  %1204 = vst [vmem:[#allocation2 + $0x138] sm:$0xff] %v1053_v53  ;;  %v887_v56 = vadd.f32 %v886_v54, %v1889_v7 }
 0x1bf   :  { %v475_v23 = vpop.f32.mrf.mxu0 }
 0x1c0   :  { %1205 = vst [vmem:[#allocation2 + $0x140] sm:$0xff] %v887_v56  ;;  %1513 = vmatmul.msk.bf16.gmra.mxu1 %vm730_vm2, %v686_v55  ;;  %1545 = vmatmul.msk.bf16.gmra.mxu2 %vm730_vm2, %v686_v55  ;;  %v476_v60 = vadd.f32 %v1771_v36, %v475_v23 }
 0x1c1   :  { %v1137_v57 = vpop.f32.mrf.mxu3 }
 0x1c2   :  { %v1138_v58 = vadd.f32 %v1137_v57, %v1897_v15  ;;  %v578_v3 = vmul.f32 0.1, %v476_v60 }
 0x1c3   :  { %v1055_v59 = vpop.f32.mrf.mxu2 }
 0x1c4   :  { %v1056_v61 = vadd.f32 %v1055_v59, %v1897_v15  ;;  %1272 = vst [vmem:[#allocation2 + $0x358] sm:$0xff] %v1138_v58  ;;  %v642_v10 = vmax.f32 %v476_v60, %v578_v3 }
 0x1c5   :  { %v888_v62 = vpop.f32.mrf.mxu1 }
 0x1c6   :  { %1206 = vst [vmem:[#allocation2 + $0x148] sm:$0xff] %v1056_v61  ;;  %v889_v1 = vadd.f32 %v888_v62, %v1889_v7 }
 0x1c7   :  { %v477_v2 = vpop.f32.mrf.mxu0 }
 0x1c8   :  { %1207 = vst [vmem:[#allocation2 + $0x150] sm:$0xff] %v889_v1  ;;  %v478_v20 = vadd.f32 %v1771_v36, %v477_v2 }
 0x1c9   :  { %v1140_v5 = vpop.f32.mrf.mxu3 }
 0x1ca   :  { %v579_v6 = vmul.f32 0.1, %v478_v20  ;;  %v1141_v8 = vadd.f32 %v1140_v5, %v1897_v15 }
 0x1cb   :  { %v1057_v9 = vpop.f32.mrf.mxu2 }
 0x1cc   :  { %v643_v11 = vmax.f32 %v478_v20, %v579_v6  ;;  %v1058_v12 = vadd.f32 %v1057_v9, %v1897_v15  ;;  %1274 = vst [vmem:[#allocation2 + $0x368] sm:$0xff] %v1141_v8 }
 0x1cd   :  { %v891_v13 = vpop.f32.mrf.mxu1 }
 0x1ce   :  { %v687_v14 = vpack.c.bf16 %v643_v11, %v642_v10  ;;  %1208 = vst [vmem:[#allocation2 + $0x158] sm:$0xff] %v1058_v12  ;;  %v892_v16 = vadd.f32 %v891_v13, %v1889_v7 }
 0x1cf   :  { %v480_v17 = vpop.f32.mrf.mxu0 }
 0x1d0   :  { %1209 = vst [vmem:[#allocation2 + $0x160] sm:$0xff] %v892_v16  ;;  %1514 = vmatmul.msk.bf16.gmra.mxu1 %vm730_vm2, %v687_v14  ;;  %1546 = vmatmul.msk.bf16.gmra.mxu2 %vm730_vm2, %v687_v14  ;;  %v481_v21 = vadd.f32 %v2049_v19, %v480_v17 }
 0x1d1   :  { %v1142_v36 = vpop.f32.mrf.mxu3 }
 0x1d2   :  { %v1143_v18 = vadd.f32 %v1142_v36, %v1897_v15  ;;  %v580_v27 = vmul.f32 0.1, %v481_v21 }
 0x1d3   :  { %v1060_v44 = vpop.f32.mrf.mxu2 }
 0x1d4   :  { %v1061_v22 = vadd.f32 %v1060_v44, %v1897_v15  ;;  %1276 = vst [vmem:[#allocation2 + $0x378] sm:$0xff] %v1143_v18  ;;  %v644_v32 = vmax.f32 %v481_v21, %v580_v27 }
 0x1d5   :  { %v893_v24 = vpop.f32.mrf.mxu1 }
 0x1d6   :  { %1210 = vst [vmem:[#allocation2 + $0x168] sm:$0xff] %v1061_v22  ;;  %v894_v25 = vadd.f32 %v893_v24, %v1889_v7 }
 0x1d7   :  { %v482_v26 = vpop.f32.mrf.mxu0 }
 0x1d8   :  { %1211 = vst [vmem:[#allocation2 + $0x170] sm:$0xff] %v894_v25  ;;  %v483_v28 = vadd.f32 %v2049_v19, %v482_v26 }
 0x1d9   :  { %v1145_v42 = vpop.f32.mrf.mxu3 }
 0x1da   :  { %v581_v29 = vmul.f32 0.1, %v483_v28  ;;  %v1146_v30 = vadd.f32 %v1145_v42, %v1897_v15 }
 0x1db   :  { %v1062_v31 = vpop.f32.mrf.mxu2 }
 0x1dc   :  { %v645_v33 = vmax.f32 %v483_v28, %v581_v29  ;;  %v1063_v4 = vadd.f32 %v1062_v31, %v1897_v15  ;;  %1278 = vst [vmem:[#allocation2 + $0x388] sm:$0xff] %v1146_v30 }
 0x1dd   :  { %v896_v34 = vpop.f32.mrf.mxu1 }
 0x1de   :  { %v688_v35 = vpack.c.bf16 %v645_v33, %v644_v32  ;;  %1212 = vst [vmem:[#allocation2 + $0x178] sm:$0xff] %v1063_v4  ;;  %v897_v37 = vadd.f32 %v896_v34, %v1889_v7 }
 0x1df   :  { %v485_v39 = vpop.f32.mrf.mxu0 }
 0x1e0   :  { %1213 = vst [vmem:[#allocation2 + $0x180] sm:$0xff] %v897_v37  ;;  %1515 = vmatmul.msk.bf16.gmra.mxu1 %vm730_vm2, %v688_v35  ;;  %1547 = vmatmul.msk.bf16.gmra.mxu2 %vm730_vm2, %v688_v35  ;;  %v486_v0 = vadd.f32 %v2049_v19, %v485_v39 }
 0x1e1   :  { %v1147_v40 = vpop.f32.mrf.mxu3 }
 0x1e2   :  { %v1148_v41 = vadd.f32 %v1147_v40, %v1897_v15  ;;  %v582_v50 = vmul.f32 0.1, %v486_v0 }
 0x1e3   :  { %v1065_v43 = vpop.f32.mrf.mxu2 }
 0x1e4   :  { %v1066_v46 = vadd.f32 %v1065_v43, %v1897_v15  ;;  %1280 = vst [vmem:[#allocation2 + $0x398] sm:$0xff] %v1148_v41  ;;  %v646_v55 = vmax.f32 %v486_v0, %v582_v50 }
 0x1e5   :  { %v898_v47 = vpop.f32.mrf.mxu1 }
 0x1e6   :  { %1214 = vst [vmem:[#allocation2 + $0x188] sm:$0xff] %v1066_v46  ;;  %v899_v48 = vadd.f32 %v898_v47, %v1889_v7  ;;  %v501_v46 = vadd.f32 %v2049_v19, %v1775_v38  ;;  %v503_v47 = vadd.f32 %v2049_v19, %v1778_v45 }
 0x1e7   :  { %v487_v49 = vpop.f32.mrf.mxu0 }
 0x1e8   :  { %1215 = vst [vmem:[#allocation2 + $0x190] sm:$0xff] %v899_v48  ;;  %v488_v51 = vadd.f32 %v2049_v19, %v487_v49 }
 0x1e9   :  { %v1150_v52 = vpop.f32.mrf.mxu3 }
 0x1ea   :  { %v583_v63 = vmul.f32 0.1, %v488_v51  ;;  %v1151_v53 = vadd.f32 %v1150_v52, %v1897_v15  ;;  %v588_v52 = vmul.f32 0.1, %v501_v46 }
 0x1eb   :  { %v1067_v54 = vpop.f32.mrf.mxu2 }
 0x1ec   :  { %v647_v56 = vmax.f32 %v488_v51, %v583_v63  ;;  %v1068_v23 = vadd.f32 %v1067_v54, %v1897_v15  ;;  %1282 = vst [vmem:[#allocation2 + $0x3a8] sm:$0xff] %v1151_v53  ;;  %v589_v63 = vmul.f32 0.1, %v503_v47  ;;  %v652_v54 = vmax.f32 %v501_v46, %v588_v52 }
 0x1ed   :  { %v901_v57 = vpop.f32.mrf.mxu1 }
 0x1ee   :  { %v689_v58 = vpack.c.bf16 %v647_v56, %v646_v55  ;;  %1216 = vst [vmem:[#allocation2 + $0x198] sm:$0xff] %v1068_v23  ;;  %v902_v59 = vadd.f32 %v901_v57, %v1889_v7  ;;  %v653_v55 = vmax.f32 %v503_v47, %v589_v63 }
 0x1ef   :  { %v490_v60 = vpop.f32.mrf.mxu0 }
 0x1f0   :  { %1217 = vst [vmem:[#allocation2 + $0x1a0] sm:$0xff] %v902_v59  ;;  %1516 = vmatmul.msk.bf16.gmra.mxu1 %vm730_vm2, %v689_v58  ;;  %1548 = vmatmul.msk.bf16.gmra.mxu2 %vm730_vm2, %v689_v58  ;;  %v491_v2 = vadd.f32 %v2049_v19, %v490_v60  ;;  %v692_v45 = vpack.c.bf16 %v653_v55, %v652_v54 }
 0x1f1   :  { %v1152_v61 = vpop.f32.mrf.mxu3 }
 0x1f2   :  { %v1153_v62 = vadd.f32 %v1152_v61, %v1897_v15  ;;  %v584_v8 = vmul.f32 0.1, %v491_v2 }
 0x1f3   :  { %v1070_v1 = vpop.f32.mrf.mxu2 }
 0x1f4   :  { %v1071_v3 = vadd.f32 %v1070_v1, %v1897_v15  ;;  %1284 = vst [vmem:[#allocation2 + $0x3b8] sm:$0xff] %v1153_v62  ;;  %v648_v14 = vmax.f32 %v491_v2, %v584_v8 }
 0x1f5   :  { %v903_v20 = vpop.f32.mrf.mxu1 }
 0x1f6   :  { %1218 = vst [vmem:[#allocation2 + $0x1a8] sm:$0xff] %v1071_v3  ;;  %v904_v5 = vadd.f32 %v903_v20, %v1889_v7 }
 0x1f7   :  { %v492_v6 = vpop.f32.mrf.mxu0 }
 0x1f8   :  { %1219 = vst [vmem:[#allocation2 + $0x1b0] sm:$0xff] %v904_v5  ;;  %v493_v9 = vadd.f32 %v2049_v19, %v492_v6 }
 0x1f9   :  { %v1155_v10 = vpop.f32.mrf.mxu3 }
 0x1fa   :  { %v585_v11 = vmul.f32 0.1, %v493_v9  ;;  %v1156_v12 = vadd.f32 %v1155_v10, %v1897_v15 }
 0x1fb   :  { %v1072_v13 = vpop.f32.mrf.mxu2 }
 0x1fc   :  { %v649_v16 = vmax.f32 %v493_v9, %v585_v11  ;;  %v1073_v17 = vadd.f32 %v1072_v13, %v1897_v15  ;;  %1286 = vst [vmem:[#allocation2 + $0x3c8] sm:$0xff] %v1156_v12 }
 0x1fd   :  { %v906_v36 = vpop.f32.mrf.mxu1 }
 0x1fe   :  { %v690_v18 = vpack.c.bf16 %v649_v16, %v648_v14  ;;  %1220 = vst [vmem:[#allocation2 + $0x1b8] sm:$0xff] %v1073_v17  ;;  %v907_v44 = vadd.f32 %v906_v36, %v1889_v7 }
 0x1ff   :  { %v495_v21 = vpop.f32.mrf.mxu0 }
 0x200   :  { %1221 = vst [vmem:[#allocation2 + $0x1c0] sm:$0xff] %v907_v44  ;;  %1517 = vmatmul.msk.bf16.gmra.mxu1 %vm730_vm2, %v690_v18  ;;  %1549 = vmatmul.msk.bf16.gmra.mxu2 %vm730_vm2, %v690_v18  ;;  %v496_v26 = vadd.f32 %v2049_v19, %v495_v21 }
 0x201   :  { %v1157_v22 = vpop.f32.mrf.mxu3 }
 0x202   :  { %v1158_v24 = vadd.f32 %v1157_v22, %v1897_v15  ;;  %v586_v30 = vmul.f32 0.1, %v496_v26 }
 0x203   :  { %v1075_v25 = vpop.f32.mrf.mxu2 }
 0x204   :  { %v1076_v27 = vadd.f32 %v1075_v25, %v1897_v15  ;;  %1288 = vst [vmem:[#allocation2 + $0x3d8] sm:$0xff] %v1158_v24  ;;  %v650_v35 = vmax.f32 %v496_v26, %v586_v30 }
 0x205   :  { %v908_v28 = vpop.f32.mrf.mxu1 }
 0x206   :  { %1222 = vst [vmem:[#allocation2 + $0x1c8] sm:$0xff] %v1076_v27  ;;  %v909_v42 = vadd.f32 %v908_v28, %v1889_v7 }
 0x207   :  { %v497_v29 = vpop.f32.mrf.mxu0 }
 0x208   :  { %1223 = vst [vmem:[#allocation2 + $0x1d0] sm:$0xff] %v909_v42  ;;  %v498_v31 = vadd.f32 %v2049_v19, %v497_v29 }
 0x209   :  { %v1160_v32 = vpop.f32.mrf.mxu3 }
 0x20a   :  { %v587_v33 = vmul.f32 0.1, %v498_v31  ;;  %v1161_v4 = vadd.f32 %v1160_v32, %v1897_v15 }
 0x20b   :  { %v1077_v34 = vpop.f32.mrf.mxu2 }
 0x20c   :  { %v651_v37 = vmax.f32 %v498_v31, %v587_v33  ;;  %v1078_v39 = vadd.f32 %v1077_v34, %v1897_v15  ;;  %1290 = vst [vmem:[#allocation2 + $0x3e8] sm:$0xff] %v1161_v4 }
 0x20d   :  { %v911_v40 = vpop.f32.mrf.mxu1 }
 0x20e   :  { %v691_v41 = vpack.c.bf16 %v651_v37, %v650_v35  ;;  %1224 = vst [vmem:[#allocation2 + $0x1d8] sm:$0xff] %v1078_v39  ;;  %v912_v43 = vadd.f32 %v911_v40, %v1889_v7 }
 0x210   :  { %1225 = vst [vmem:[#allocation2 + $0x1e0] sm:$0xff] %v912_v43  ;;  %1518 = vmatmul.msk.bf16.gmra.mxu1 %vm730_vm2, %v691_v41  ;;  %1550 = vmatmul.msk.bf16.gmra.mxu2 %vm730_vm2, %v691_v41 }
 0x211   :  { %v1162_v0 = vpop.f32.mrf.mxu3 }
 0x212   :  { %v1163_v48 = vadd.f32 %v1162_v0, %v1897_v15 }
 0x213   :  { %v1080_v49 = vpop.f32.mrf.mxu2 }
 0x214   :  { %v1081_v50 = vadd.f32 %v1080_v49, %v1897_v15  ;;  %1292 = vst [vmem:[#allocation2 + $0x3f8] sm:$0xff] %v1163_v48 }
 0x215   :  { %v913_v51 = vpop.f32.mrf.mxu1 }
 0x216   :  { %1226 = vst [vmem:[#allocation2 + $0x1e8] sm:$0xff] %v1081_v50  ;;  %v914_v53 = vadd.f32 %v913_v51, %v1889_v7 }
 0x218   :  { %1227 = vst [vmem:[#allocation2 + $0x1f0] sm:$0xff] %v914_v53 }
 0x21b   :  { %v1082_v56 = vpop.f32.mrf.mxu2 }
 0x21c   :  { %v1083_v38 = vadd.f32 %v1082_v56, %v1897_v15 }
 0x21d   :  { %v916_v23 = vpop.f32.mrf.mxu1 }
 0x21e   :  { %1228 = vst [vmem:[#allocation2 + $0x1f8] sm:$0xff] %v1083_v38  ;;  %v917_v19 = vadd.f32 %v916_v23, %v1889_v7 }
 0x220   :  { %1229 = vst [vmem:[#allocation2 + $0x200] sm:$0xff] %v917_v19  ;;  %1519 = vmatmul.msk.bf16.gmra.mxu1 %vm730_vm2, %v692_v45  ;;  %1551 = vmatmul.msk.bf16.gmra.mxu2 %vm730_vm2, %v692_v45 }
 0x223   :  { %v1085_v57 = vpop.f32.mrf.mxu2 }
 0x224   :  { %v1086_v58 = vadd.f32 %v1085_v57, %v1897_v15 }
 0x225   :  { %v918_v59 = vpop.f32.mrf.mxu1 }
 0x226   :  { %1230 = vst [vmem:[#allocation2 + $0x208] sm:$0xff] %v1086_v58  ;;  %v919_v60 = vadd.f32 %v918_v59, %v1889_v7 }
 0x228   :  { %1231 = vst [vmem:[#allocation2 + $0x210] sm:$0xff] %v919_v60 }
 0x22b   :  { %v1087_v61 = vpop.f32.mrf.mxu2 }
 0x22c   :  { %v1088_v62 = vadd.f32 %v1087_v61, %v1897_v15 }
 0x22d   :  { %v921_v1 = vpop.f32.mrf.mxu1 }
 0x22e   :  { %1232 = vst [vmem:[#allocation2 + $0x218] sm:$0xff] %v1088_v62  ;;  %v922_v2 = vadd.f32 %v921_v1, %v1889_v7 }
 0x230   :  { %1233 = vst [vmem:[#allocation2 + $0x220] sm:$0xff] %v922_v2 }
 0x233   :  { %v1090_v3 = vpop.f32.mrf.mxu2 }
 0x234   :  { %v1091_v20 = vadd.f32 %v1090_v3, %v1897_v15 }
 0x235   :  { %v923_v5 = vpop.f32.mrf.mxu1 }
 0x236   :  { %1234 = vst [vmem:[#allocation2 + $0x228] sm:$0xff] %v1091_v20  ;;  %v924_v6 = vadd.f32 %v923_v5, %v1889_v7 }
 0x238   :  { %1235 = vst [vmem:[#allocation2 + $0x230] sm:$0xff] %v924_v6 }
 0x23b   :  { %v1092_v8 = vpop.f32.mrf.mxu2 }
 0x23c   :  { %v1093_v9 = vadd.f32 %v1092_v8, %v1897_v15 }
 0x23d   :  { %v926_v10 = vpop.f32.mrf.mxu1 }
 0x23e   :  { %1236 = vst [vmem:[#allocation2 + $0x238] sm:$0xff] %v1093_v9  ;;  %v927_v11 = vadd.f32 %v926_v10, %v1889_v7 }
 0x240   :  { %1237 = vst [vmem:[#allocation2 + $0x240] sm:$0xff] %v927_v11 }
 0x243   :  { %v1095_v12 = vpop.f32.mrf.mxu2 }
 0x244   :  { %v1096_v13 = vadd.f32 %v1095_v12, %v1897_v15 }
 0x245   :  { %v928_v14 = vpop.f32.mrf.mxu1 }
 0x246   :  { %1238 = vst [vmem:[#allocation2 + $0x248] sm:$0xff] %v1096_v13  ;;  %v929_v16 = vadd.f32 %v928_v14, %v1889_v7 }
 0x248   :  { %1239 = vst [vmem:[#allocation2 + $0x250] sm:$0xff] %v929_v16 }
 0x24b   :  { %v1097_v17 = vpop.f32.mrf.mxu2 }
 0x24c   :  { %v1098_v36 = vadd.f32 %v1097_v17, %v1897_v15 }
 0x24d   :  { %v931_v18 = vpop.f32.mrf.mxu1 }
 0x24e   :  { %1240 = vst [vmem:[#allocation2 + $0x258] sm:$0xff] %v1098_v36  ;;  %v932_v44 = vadd.f32 %v931_v18, %v1889_v7 }
 0x250   :  { %1241 = vst [vmem:[#allocation2 + $0x260] sm:$0xff] %v932_v44 }
 0x253   :  { %v1100_v21 = vpop.f32.mrf.mxu2 }
 0x254   :  { %v1101_v22 = vadd.f32 %v1100_v21, %v1897_v15 }
 0x255   :  { %v933_v24 = vpop.f32.mrf.mxu1 }
 0x256   :  { %1242 = vst [vmem:[#allocation2 + $0x268] sm:$0xff] %v1101_v22  ;;  %v934_v25 = vadd.f32 %v933_v24, %v1889_v7 }
 0x258   :  { %1243 = vst [vmem:[#allocation2 + $0x270] sm:$0xff] %v934_v25 }
 0x25b   :  { %v1102_v26 = vpop.f32.mrf.mxu2 }
 0x25c   :  { %v1103_v27 = vadd.f32 %v1102_v26, %v1897_v15 }
 0x25d   :  { %v936_v28 = vpop.f32.mrf.mxu1 }
 0x25e   :  { %1244 = vst [vmem:[#allocation2 + $0x278] sm:$0xff] %v1103_v27  ;;  %v937_v42 = vadd.f32 %v936_v28, %v1889_v7 }
 0x260   :  { %1245 = vst [vmem:[#allocation2 + $0x280] sm:$0xff] %v937_v42 }
 0x263   :  { %v1105_v29 = vpop.f32.mrf.mxu2 }
 0x264   :  { %v1106_v30 = vadd.f32 %v1105_v29, %v1897_v15 }
 0x265   :  { %v938_v31 = vpop.f32.mrf.mxu1 }
 0x266   :  { %1246 = vst [vmem:[#allocation2 + $0x288] sm:$0xff] %v1106_v30  ;;  %v939_v32 = vadd.f32 %v938_v31, %v1889_v7 }
 0x268   :  { %1247 = vst [vmem:[#allocation2 + $0x290] sm:$0xff] %v939_v32 }
 0x26b   :  { %v1107_v33 = vpop.f32.mrf.mxu2 }
 0x26c   :  { %v1108_v4 = vadd.f32 %v1107_v33, %v1897_v15 }
 0x26d   :  { %v941_v34 = vpop.f32.mrf.mxu1 }
 0x26e   :  { %1248 = vst [vmem:[#allocation2 + $0x298] sm:$0xff] %v1108_v4  ;;  %v942_v35 = vadd.f32 %v941_v34, %v1889_v7 }
 0x270   :  { %1249 = vst [vmem:[#allocation2 + $0x2a0] sm:$0xff] %v942_v35 }
 0x273   :  { %v1110_v37 = vpop.f32.mrf.mxu2 }
 0x274   :  { %v1111_v39 = vadd.f32 %v1110_v37, %v1897_v15 }
 0x275   :  { %v943_v40 = vpop.f32.mrf.mxu1 }
 0x276   :  { %1250 = vst [vmem:[#allocation2 + $0x2a8] sm:$0xff] %v1111_v39  ;;  %v944_v41 = vadd.f32 %v943_v40, %v1889_v7 }
 0x278   :  { %1251 = vst [vmem:[#allocation2 + $0x2b0] sm:$0xff] %v944_v41 }
 0x27b   :  { %v1112_v43 = vpop.f32.mrf.mxu2 }
 0x27c   :  { %v1113_v0 = vadd.f32 %v1112_v43, %v1897_v15 }
 0x27d   :  { %v946_v46 = vpop.f32.mrf.mxu1 }
 0x27e   :  { %1252 = vst [vmem:[#allocation2 + $0x2b8] sm:$0xff] %v1113_v0  ;;  %v947_v47 = vadd.f32 %v946_v46, %v1889_v7 }
 0x280   :  { %1253 = vst [vmem:[#allocation2 + $0x2c0] sm:$0xff] %v947_v47 }
 0x283   :  { %v1115_v48 = vpop.f32.mrf.mxu2 }
 0x284   :  { %v1116_v49 = vadd.f32 %v1115_v48, %v1897_v15 }
 0x285   :  { %v948_v50 = vpop.f32.mrf.mxu1 }
 0x286   :  { %1254 = vst [vmem:[#allocation2 + $0x2c8] sm:$0xff] %v1116_v49  ;;  %v949_v51 = vadd.f32 %v948_v50, %v1889_v7 }
 0x288   :  { %1255 = vst [vmem:[#allocation2 + $0x2d0] sm:$0xff] %v949_v51 }
 0x28b   :  { %v1117_v52 = vpop.f32.mrf.mxu2 }
 0x28c   :  { %v1118_v63 = vadd.f32 %v1117_v52, %v1897_v15 }
 0x28d   :  { %v951_v53 = vpop.f32.mrf.mxu1 }
 0x28e   :  { %1256 = vst [vmem:[#allocation2 + $0x2d8] sm:$0xff] %v1118_v63  ;;  %v952_v54 = vadd.f32 %v951_v53, %v1889_v7 }
 0x290   :  { %1257 = vst [vmem:[#allocation2 + $0x2e0] sm:$0xff] %v952_v54 }
 0x293   :  { %v1120_v55 = vpop.f32.mrf.mxu2 }
 0x294   :  { %v1121_v56 = vadd.f32 %v1120_v55, %v1897_v15 }
 0x295   :  { %v953_v38 = vpop.f32.mrf.mxu1 }
 0x296   :  { %1258 = vst [vmem:[#allocation2 + $0x2e8] sm:$0xff] %v1121_v56  ;;  %v954_v23 = vadd.f32 %v953_v38, %v1889_v7 }
 0x298   :  { %1259 = vst [vmem:[#allocation2 + $0x2f0] sm:$0xff] %v954_v23 }
 0x29b   :  { %v1122_v45 = vpop.f32.mrf.mxu2 }
 0x29c   :  { %v1123_v19 = vadd.f32 %v1122_v45, %v1897_v15 }
 0x29d   :  { %v956_v57 = vpop.f32.mrf.mxu1 }
 0x29e   :  { %1260 = vst [vmem:[#allocation2 + $0x2f8] sm:$0xff] %v1123_v19  ;;  %v957_v58 = vadd.f32 %v956_v57, %v1889_v7 }
 0x2a0   :  { %1261 = vst [vmem:[#allocation2 + $0x300] sm:$0xff] %v957_v58 }
 0x2a3   :  { %v1125_v59 = vpop.f32.mrf.mxu2 }
 0x2a4   :  { %v1126_v60 = vadd.f32 %v1125_v59, %v1897_v15 }
 0x2a5   :  { %v958_v61 = vpop.f32.mrf.mxu1 }
 0x2a6   :  { %1262 = vst [vmem:[#allocation2 + $0x308] sm:$0xff] %v1126_v60  ;;  %v959_v62 = vadd.f32 %v958_v61, %v1889_v7 }
 0x2a8   :  { %1263 = vst [vmem:[#allocation2 + $0x310] sm:$0xff] %v959_v62 }
 0x2ab   :  { %v1127_v1 = vpop.f32.mrf.mxu2 }
 0x2ac   :  { %v1128_v2 = vadd.f32 %v1127_v1, %v1897_v15 }
 0x2ae   :  { %1264 = vst [vmem:[#allocation2 + $0x318] sm:$0xff] %v1128_v2 }
 0x2af   :  { %1305 = dma.vmem_to_hbm [thread:$0]  %s1298_s28, 16384, %s1300_s30, [#allocation3], %s1636_s6, %s1636_s6, %s1637_s7  }
 0x2b0   :  { %1633 = dma.done.wait [#allocation3], 16384  }
 0x2b1   :  { %1634 = vsyncadd [#allocation3], 4294950912 }
 0x2b2   :  { %1310 = vsyncpa [#allocation3], 1 }

</bundles_post_ra>
